<compile_context>
chip_gen: v6e
topology: v6e:2x2x1
jax: 0.10.0
libtpu: 0.0.40
codegen_flags: <defaults>
</compile_context>

<pallas_src>
import math

import jax
import jax.numpy as jnp
from jax.experimental import pallas as pl
from jax.experimental.pallas import tpu as pltpu

# ---------------- model hyper-parameters (small, deterministic) -------------
DIM = 32
DEPTH = 2
HEADS = 4
DIM_HEAD = 8
MLP_DIM = 64
INNER = HEADS * DIM_HEAD          # 32
SCALE = DIM_HEAD ** (-0.5)
LN_EPS = 1e-5

BATCH = 2
SEQ = 8
ROWS = BATCH * SEQ                # 16

N_VEC = 6                         # per-layer DIM-sized vectors packed per layer
# packed row order per layer: [attn_gamma, attn_beta, b_out, ff_gamma, ff_beta, b2]
# followed (after all layers) by [final_gamma, final_beta]


# ---------------------------- kernel helpers --------------------------------
def _layernorm(x, gamma, beta):
    # x: (rows, dim); gamma/beta: (1, dim).
    # PyTorch LayerNorm: biased variance, eps inside sqrt. rsqrt -> EUP.
    mu = jnp.mean(x, axis=-1, keepdims=True)
    var = jnp.mean((x - mu) ** 2, axis=-1, keepdims=True)
    return (x - mu) * jax.lax.rsqrt(var + LN_EPS) * gamma + beta


# ---------------------------- fused transformer kernel ----------------------
def transformer_kernel(x_ref, vecs_ref, b1_ref, wq_ref, wk_ref, wv_ref,
                       wout_ref, w1_ref, w2_ref, o_ref):
    """Entire DEPTH-layer ViT encoder; everything VMEM-resident, grid=()."""
    x = x_ref[...]                                         # (ROWS, DIM)

    for layer in range(DEPTH):                             # static, DEPTH=2
        base = layer * N_VEC
        attn_g = vecs_ref[base + 0:base + 1, :]            # (1, DIM)
        attn_b = vecs_ref[base + 1:base + 2, :]
        b_out = vecs_ref[base + 2:base + 3, :]
        ff_g = vecs_ref[base + 3:base + 4, :]
        ff_b = vecs_ref[base + 4:base + 5, :]
        b2 = vecs_ref[base + 5:base + 6, :]
        b1 = b1_ref[layer:layer + 1, :]                    # (1, MLP_DIM)

        wq = wq_ref[layer]                                 # (HEADS, DIM, DIM_HEAD)
        wk = wk_ref[layer]
        wv = wv_ref[layer]
        wout = wout_ref[layer]                             # (HEADS, DIM_HEAD, DIM)

        # ---------------- attention block (pre-LN, MHA, residual) -----------
        ln = _layernorm(x, attn_g, attn_b)                 # (ROWS, DIM)
        # leading-dim broadcast only (no lane/sublane crossing)
        lnb = jnp.broadcast_to(ln, (HEADS, ROWS, DIM))

        # batched per-head projections straight into (HEADS, ROWS, DIM_HEAD)
        qh = jnp.einsum("hrd,hde->hre", lnb, wq,
                        preferred_element_type=jnp.float32)
        kh = jnp.einsum("hrd,hde->hre", lnb, wk,
                        preferred_element_type=jnp.float32)
        vh = jnp.einsum("hrd,hde->hre", lnb, wv,
                        preferred_element_type=jnp.float32)

        # leading-dim reshape (HEADS, BATCH*SEQ, Dh) -> (HEADS*BATCH, SEQ, Dh)
        # g = h * BATCH + b  (consistent for q, k, v, out)
        qg = qh.reshape(HEADS * BATCH, SEQ, DIM_HEAD)
        kg = kh.reshape(HEADS * BATCH, SEQ, DIM_HEAD)
        vg = vh.reshape(HEADS * BATCH, SEQ, DIM_HEAD)

        dots = jnp.einsum("gnd,gmd->gnm", qg, kg,
                          preferred_element_type=jnp.float32) * SCALE
        dots = dots - jnp.max(dots, axis=-1, keepdims=True)
        e = jnp.exp(dots)
        inv = 1.0 / jnp.sum(e, axis=-1, keepdims=True)     # exact, per-row
        attn = e * inv
        og = jnp.einsum("gnm,gmd->gnd", attn, vg,
                        preferred_element_type=jnp.float32)  # (H*B, SEQ, Dh)

        # leading-dim reshape back to (HEADS, ROWS, Dh); per-head accumulated
        # output projection (no lane concat).
        oh = og.reshape(HEADS, ROWS, DIM_HEAD)
        attn_out = jnp.dot(oh[0], wout[0], preferred_element_type=jnp.float32)
        for h in range(1, HEADS):
            attn_out = attn_out + jnp.dot(oh[h], wout[h],
                                          preferred_element_type=jnp.float32)

        x = attn_out + b_out + x

        # ---------------- feed-forward block (pre-LN, GELU, residual) -------
        ln = _layernorm(x, ff_g, ff_b)
        h1 = jnp.dot(ln, w1_ref[layer],
                     preferred_element_type=jnp.float32) + b1
        # exact GELU (erf) — matches nn.GELU() default
        h1 = 0.5 * h1 * (1.0 + jax.lax.erf(h1 * (1.0 / math.sqrt(2.0))))
        x = jnp.dot(h1, w2_ref[layer],
                    preferred_element_type=jnp.float32) + b2 + x

    # ------------------------- final LayerNorm ------------------------------
    fg = vecs_ref[DEPTH * N_VEC + 0:DEPTH * N_VEC + 1, :]
    fb = vecs_ref[DEPTH * N_VEC + 1:DEPTH * N_VEC + 2, :]
    o_ref[...] = _layernorm(x, fg, fb)


# ---------------------------- pallas_call wrapper ----------------------------
def _transformer_forward(x, vecs, b1_all, wq_all, wk_all, wv_all,
                         wout_all, w1_all, w2_all):
    b, n, d = x.shape
    x2d = x.reshape(b * n, d)
    vmem = lambda: pl.BlockSpec(memory_space=pltpu.MemorySpace.VMEM)
    out2d = pl.pallas_call(
        transformer_kernel,
        out_shape=jax.ShapeDtypeStruct((b * n, d), x.dtype),
        in_specs=[vmem() for _ in range(9)],
        out_specs=vmem(),
    )(x2d, vecs, b1_all, wq_all, wk_all, wv_all, wout_all, w1_all, w2_all)
    return out2d.reshape(b, n, d)


transformer_forward = jax.jit(_transformer_forward)


# ---------------------------- parameter init ---------------------------------
def init_params(key):
    params = []
    for _ in range(DEPTH):
        key, *ks = jax.random.split(key, 11)
        layer = {
            # attention
            "attn_gamma": 1.0 + 0.02 * jax.random.normal(ks[0], (DIM,), jnp.float32),
            "attn_beta": 0.02 * jax.random.normal(ks[1], (DIM,), jnp.float32),
            "w_qkv": 0.05 * jax.random.normal(ks[2], (DIM, 3 * INNER), jnp.float32),
            "w_out": 0.05 * jax.random.normal(ks[3], (INNER, DIM), jnp.float32),
            "b_out": 0.02 * jax.random.normal(ks[4], (DIM,), jnp.float32),
            # feed-forward
            "ff_gamma": 1.0 + 0.02 * jax.random.normal(ks[5], (DIM,), jnp.float32),
            "ff_beta": 0.02 * jax.random.normal(ks[6], (DIM,), jnp.float32),
            "w1": 0.05 * jax.random.normal(ks[7], (DIM, MLP_DIM), jnp.float32),
            "b1": 0.02 * jax.random.normal(ks[8], (MLP_DIM,), jnp.float32),
            "w2": 0.05 * jax.random.normal(ks[9], (MLP_DIM, DIM), jnp.float32),
            "b2": jnp.zeros((DIM,), jnp.float32),
        }
        params.append(layer)
    key, k1, k2 = jax.random.split(key, 3)
    final = {
        "gamma": 1.0 + 0.02 * jax.random.normal(k1, (DIM,), jnp.float32),
        "beta": 0.02 * jax.random.normal(k2, (DIM,), jnp.float32),
    }
    return params, final


def pack_params(params, final):
    """Pack small vectors into one slab and repack weights per-head, stacked
    over DEPTH. Head-major column order of w_qkv / row order of w_out matches
    rearrange('b n (h d) -> b h n d')."""
    rows = []
    for L in params:
        rows += [L["attn_gamma"], L["attn_beta"], L["b_out"],
                 L["ff_gamma"], L["ff_beta"], L["b2"]]
    rows += [final["gamma"], final["beta"]]
    vecs = jnp.stack(rows, axis=0)                                  # (DEPTH*6+2, DIM)
    b1_all = jnp.stack([L["b1"] for L in params], axis=0)           # (DEPTH, MLP_DIM)

    def per_head_w(w_qkv, part):
        # columns [part*INNER : (part+1)*INNER], column = h*DIM_HEAD + e
        w = w_qkv[:, part * INNER:(part + 1) * INNER]               # (DIM, INNER)
        return w.reshape(DIM, HEADS, DIM_HEAD).transpose(1, 0, 2)   # (HEADS, DIM, Dh)

    wq_all = jnp.stack([per_head_w(L["w_qkv"], 0) for L in params], 0)  # (D,H,DIM,Dh)
    wk_all = jnp.stack([per_head_w(L["w_qkv"], 1) for L in params], 0)
    wv_all = jnp.stack([per_head_w(L["w_qkv"], 2) for L in params], 0)
    wout_all = jnp.stack(
        [L["w_out"].reshape(HEADS, DIM_HEAD, DIM) for L in params], 0)  # (D,H,Dh,DIM)
    w1_all = jnp.stack([L["w1"] for L in params], axis=0)           # (DEPTH, DIM, MLP_DIM)
    w2_all = jnp.stack([L["w2"] for L in params], axis=0)           # (DEPTH, MLP_DIM, DIM)
    return vecs, b1_all, wq_all, wk_all, wv_all, wout_all, w1_all, w2_all


# ---------------------------- reference (pure JAX) ----------------------------
def _ref_forward(x, params, final):
    def ln(t, g, b_):
        mu = jnp.mean(t, -1, keepdims=True)
        var = jnp.mean((t - mu) ** 2, -1, keepdims=True)
        return (t - mu) / jnp.sqrt(var + LN_EPS) * g + b_

    for L in params:
        h = ln(x, L["attn_gamma"], L["attn_beta"])
        qkv = h @ L["w_qkv"]
        q, k, v = jnp.split(qkv, 3, axis=-1)

        def heads(t):
            b, n, _ = t.shape
            return t.reshape(b, n, HEADS, DIM_HEAD).transpose(0, 2, 1, 3)

        q, k, v = heads(q), heads(k), heads(v)
        dots = jnp.einsum("bhnd,bhmd->bhnm", q, k) * SCALE
        attn = jax.nn.softmax(dots, axis=-1)
        o = jnp.einsum("bhnm,bhmd->bhnd", attn, v)
        o = o.transpose(0, 2, 1, 3).reshape(x.shape[0], x.shape[1], INNER)
        x = o @ L["w_out"] + L["b_out"] + x

        h = ln(x, L["ff_gamma"], L["ff_beta"])
        h = h @ L["w1"] + L["b1"]
        h = 0.5 * h * (1.0 + jax.lax.erf(h / math.sqrt(2.0)))
        x = h @ L["w2"] + L["b2"] + x
    return ln(x, final["gamma"], final["beta"])


# ---------------------------- main --------------------------------------------
if __name__ == "__main__":
    key = jax.random.PRNGKey(0)
    key, kx, kp = jax.random.split(key, 3)

    x = jax.random.normal(kx, (BATCH, SEQ, DIM), jnp.float32)
    params, final = init_params(kp)
    packed = pack_params(params, final)

    out = transformer_forward(x, *packed)
    out = jax.block_until_ready(out)

    ref = _ref_forward(x, params, final)
    assert out.shape == (BATCH, SEQ, DIM)
    assert jnp.allclose(out, ref, atol=1e-4, rtol=1e-4), "mismatch vs reference"

    print("KERNEL_OK")
</pallas_src>

<mosaic_0001>
module attributes {stable_mosaic.version = 11 : i64} {
  func.func @transformer_kernel(%arg0: memref<16x32xf32, #tpu.memory_space<vmem>>, %arg1: memref<14x32xf32, #tpu.memory_space<vmem>>, %arg2: memref<2x64xf32, #tpu.memory_space<vmem>>, %arg3: memref<2x4x32x8xf32, #tpu.memory_space<vmem>>, %arg4: memref<2x4x32x8xf32, #tpu.memory_space<vmem>>, %arg5: memref<2x4x32x8xf32, #tpu.memory_space<vmem>>, %arg6: memref<2x4x8x32xf32, #tpu.memory_space<vmem>>, %arg7: memref<2x32x64xf32, #tpu.memory_space<vmem>>, %arg8: memref<2x64x32xf32, #tpu.memory_space<vmem>>, %arg9: memref<16x32xf32, #tpu.memory_space<vmem>>) attributes {dimension_semantics = [], scalar_prefetch = 0 : i64, scratch_operands = 0 : i64, tpu.core_type = #tpu.core_type<tc>} {
    %c0 = arith.constant 0 : index
    %c0_0 = arith.constant 0 : index
    %0 = vector.load %arg0[%c0, %c0_0] : memref<16x32xf32, #tpu.memory_space<vmem>>, vector<16x32xf32>
    %c0_1 = arith.constant 0 : index
    %c0_2 = arith.constant 0 : index
    %1 = vector.load %arg1[%c0_1, %c0_2] : memref<14x32xf32, #tpu.memory_space<vmem>>, vector<1x32xf32>
    %c1 = arith.constant 1 : index
    %c0_3 = arith.constant 0 : index
    %2 = vector.load %arg1[%c1, %c0_3] : memref<14x32xf32, #tpu.memory_space<vmem>>, vector<1x32xf32>
    %c2 = arith.constant 2 : index
    %c0_4 = arith.constant 0 : index
    %3 = vector.load %arg1[%c2, %c0_4] : memref<14x32xf32, #tpu.memory_space<vmem>>, vector<1x32xf32>
    %c3 = arith.constant 3 : index
    %c0_5 = arith.constant 0 : index
    %4 = vector.load %arg1[%c3, %c0_5] : memref<14x32xf32, #tpu.memory_space<vmem>>, vector<1x32xf32>
    %c4 = arith.constant 4 : index
    %c0_6 = arith.constant 0 : index
    %5 = vector.load %arg1[%c4, %c0_6] : memref<14x32xf32, #tpu.memory_space<vmem>>, vector<1x32xf32>
    %c5 = arith.constant 5 : index
    %c0_7 = arith.constant 0 : index
    %6 = vector.load %arg1[%c5, %c0_7] : memref<14x32xf32, #tpu.memory_space<vmem>>, vector<1x32xf32>
    %c0_8 = arith.constant 0 : index
    %c0_9 = arith.constant 0 : index
    %7 = vector.load %arg2[%c0_8, %c0_9] : memref<2x64xf32, #tpu.memory_space<vmem>>, vector<1x64xf32>
    %c0_10 = arith.constant 0 : index
    %c0_11 = arith.constant 0 : index
    %c0_12 = arith.constant 0 : index
    %c0_13 = arith.constant 0 : index
    %8 = vector.load %arg3[%c0_10, %c0_11, %c0_12, %c0_13] : memref<2x4x32x8xf32, #tpu.memory_space<vmem>>, vector<1x4x32x8xf32>
    %9 = vector.shape_cast %8 : vector<1x4x32x8xf32> to vector<4x32x8xf32>
    %c0_14 = arith.constant 0 : index
    %c0_15 = arith.constant 0 : index
    %c0_16 = arith.constant 0 : index
    %c0_17 = arith.constant 0 : index
    %10 = vector.load %arg4[%c0_14, %c0_15, %c0_16, %c0_17] : memref<2x4x32x8xf32, #tpu.memory_space<vmem>>, vector<1x4x32x8xf32>
    %11 = vector.shape_cast %10 : vector<1x4x32x8xf32> to vector<4x32x8xf32>
    %c0_18 = arith.constant 0 : index
    %c0_19 = arith.constant 0 : index
    %c0_20 = arith.constant 0 : index
    %c0_21 = arith.constant 0 : index
    %12 = vector.load %arg5[%c0_18, %c0_19, %c0_20, %c0_21] : memref<2x4x32x8xf32, #tpu.memory_space<vmem>>, vector<1x4x32x8xf32>
    %13 = vector.shape_cast %12 : vector<1x4x32x8xf32> to vector<4x32x8xf32>
    %c0_22 = arith.constant 0 : index
    %c0_23 = arith.constant 0 : index
    %c0_24 = arith.constant 0 : index
    %c0_25 = arith.constant 0 : index
    %14 = vector.load %arg6[%c0_22, %c0_23, %c0_24, %c0_25] : memref<2x4x8x32xf32, #tpu.memory_space<vmem>>, vector<1x4x8x32xf32>
    %15 = vector.shape_cast %14 : vector<1x4x8x32xf32> to vector<4x8x32xf32>
    %cst = arith.constant dense<0.000000e+00> : vector<16xf32>
    %16 = vector.multi_reduction <add>, %0, %cst [1] : vector<16x32xf32> to vector<16xf32>
    %17 = vector.shape_cast %16 : vector<16xf32> to vector<16x1xf32>
    %cst_26 = arith.constant 3.200000e+01 : f32
    %18 = vector.broadcast %cst_26 : f32 to vector<16x1xf32>
    %19 = arith.divf %17, %18 : vector<16x1xf32>
    %20 = vector.broadcast %19 : vector<16x1xf32> to vector<16x32xf32>
    %21 = arith.subf %0, %20 : vector<16x32xf32>
    %22 = arith.mulf %21, %21 : vector<16x32xf32>
    %cst_27 = arith.constant dense<0.000000e+00> : vector<16xf32>
    %23 = vector.multi_reduction <add>, %22, %cst_27 [1] : vector<16x32xf32> to vector<16xf32>
    %24 = vector.shape_cast %23 : vector<16xf32> to vector<16x1xf32>
    %cst_28 = arith.constant 3.200000e+01 : f32
    %25 = vector.broadcast %cst_28 : f32 to vector<16x1xf32>
    %26 = arith.divf %24, %25 : vector<16x1xf32>
    %27 = vector.broadcast %19 : vector<16x1xf32> to vector<16x32xf32>
    %28 = arith.subf %0, %27 : vector<16x32xf32>
    %cst_29 = arith.constant 9.99999974E-6 : f32
    %29 = vector.broadcast %cst_29 : f32 to vector<16x1xf32>
    %30 = arith.addf %26, %29 : vector<16x1xf32>
    %31 = math.rsqrt %30 : vector<16x1xf32>
    %32 = vector.broadcast %31 : vector<16x1xf32> to vector<16x32xf32>
    %33 = arith.mulf %28, %32 : vector<16x32xf32>
    %34 = vector.broadcast %1 : vector<1x32xf32> to vector<16x32xf32>
    %35 = arith.mulf %33, %34 : vector<16x32xf32>
    %36 = vector.broadcast %2 : vector<1x32xf32> to vector<16x32xf32>
    %37 = arith.addf %35, %36 : vector<16x32xf32>
    %38 = vector.shape_cast %37 : vector<16x32xf32> to vector<1x16x32xf32>
    %39 = vector.broadcast %38 : vector<1x16x32xf32> to vector<4x16x32xf32>
    "tpu.trace_start"() <{level = 10 : i32, message = "hrd,hde->hre"}> : () -> ()
    %cst_30 = arith.constant dense<0.000000e+00> : vector<4x16x8xf32>
    %40 = tpu.matmul %39, %9, %cst_30 {dimension_numbers = #tpu.dot_dimension_numbers<[2], [1], [1], [2], [0, 0, 0, 1, 1, 2], [0], [0]>} : vector<4x16x32xf32>, vector<4x32x8xf32>, vector<4x16x8xf32> -> vector<4x16x8xf32>
    %cst_31 = arith.constant dense<0.000000e+00> : vector<4x16x8xf32>
    %41 = tpu.matmul %39, %11, %cst_31 {dimension_numbers = #tpu.dot_dimension_numbers<[2], [1], [1], [2], [0, 0, 0, 1, 1, 2], [0], [0]>} : vector<4x16x32xf32>, vector<4x32x8xf32>, vector<4x16x8xf32> -> vector<4x16x8xf32>
    %cst_32 = arith.constant dense<0.000000e+00> : vector<4x16x8xf32>
    %42 = tpu.matmul %39, %13, %cst_32 {dimension_numbers = #tpu.dot_dimension_numbers<[2], [1], [1], [2], [0, 0, 0, 1, 1, 2], [0], [0]>} : vector<4x16x32xf32>, vector<4x32x8xf32>, vector<4x16x8xf32> -> vector<4x16x8xf32>
    "tpu.trace_stop"() : () -> ()
    %43 = vector.shape_cast %40 : vector<4x16x8xf32> to vector<8x8x8xf32>
    %44 = vector.shape_cast %41 : vector<4x16x8xf32> to vector<8x8x8xf32>
    %45 = vector.shape_cast %42 : vector<4x16x8xf32> to vector<8x8x8xf32>
    "tpu.trace_start"() <{level = 10 : i32, message = "gnd,gmd->gnm"}> : () -> ()
    %cst_33 = arith.constant dense<0.000000e+00> : vector<8x8x8xf32>
    %46 = tpu.matmul %43, %44, %cst_33 {dimension_numbers = #tpu.dot_dimension_numbers<[2], [2], [1], [1], [0, 0, 0, 1, 1, 1], [0], [0]>} : vector<8x8x8xf32>, vector<8x8x8xf32>, vector<8x8x8xf32> -> vector<8x8x8xf32>
    "tpu.trace_stop"() : () -> ()
    %cst_34 = arith.constant 0.353553385 : f32
    %47 = vector.broadcast %cst_34 : f32 to vector<8x8x8xf32>
    %48 = arith.mulf %46, %47 : vector<8x8x8xf32>
    %cst_35 = arith.constant dense<0xFF800000> : vector<8x8xf32>
    %49 = vector.multi_reduction <maximumf>, %48, %cst_35 [2] : vector<8x8x8xf32> to vector<8x8xf32>
    %50 = vector.shape_cast %49 : vector<8x8xf32> to vector<8x8x1xf32>
    %51 = vector.broadcast %50 : vector<8x8x1xf32> to vector<8x8x8xf32>
    %52 = arith.subf %48, %51 : vector<8x8x8xf32>
    %53 = math.exp %52 : vector<8x8x8xf32>
    %cst_36 = arith.constant dense<0.000000e+00> : vector<8x8xf32>
    %54 = vector.multi_reduction <add>, %53, %cst_36 [2] : vector<8x8x8xf32> to vector<8x8xf32>
    %55 = vector.shape_cast %54 : vector<8x8xf32> to vector<8x8x1xf32>
    %cst_37 = arith.constant 1.000000e+00 : f32
    %56 = vector.broadcast %cst_37 : f32 to vector<8x8x1xf32>
    %57 = arith.divf %56, %55 : vector<8x8x1xf32>
    %58 = vector.broadcast %57 : vector<8x8x1xf32> to vector<8x8x8xf32>
    %59 = arith.mulf %53, %58 : vector<8x8x8xf32>
    "tpu.trace_start"() <{level = 10 : i32, message = "gnm,gmd->gnd"}> : () -> ()
    %cst_38 = arith.constant dense<0.000000e+00> : vector<8x8x8xf32>
    %60 = tpu.matmul %59, %45, %cst_38 {dimension_numbers = #tpu.dot_dimension_numbers<[2], [1], [1], [2], [0, 0, 0, 1, 1, 2], [0], [0]>} : vector<8x8x8xf32>, vector<8x8x8xf32>, vector<8x8x8xf32> -> vector<8x8x8xf32>
    "tpu.trace_stop"() : () -> ()
    %61 = vector.shape_cast %60 : vector<8x8x8xf32> to vector<4x16x8xf32>
    %62 = vector.extract_strided_slice %61 {offsets = [0, 0, 0], sizes = [1, 16, 8], strides = [1, 1, 1]} : vector<4x16x8xf32> to vector<1x16x8xf32>
    %63 = vector.shape_cast %62 : vector<1x16x8xf32> to vector<16x8xf32>
    %64 = vector.extract_strided_slice %15 {offsets = [0, 0, 0], sizes = [1, 8, 32], strides = [1, 1, 1]} : vector<4x8x32xf32> to vector<1x8x32xf32>
    %65 = vector.shape_cast %64 : vector<1x8x32xf32> to vector<8x32xf32>
    %cst_39 = arith.constant dense<0.000000e+00> : vector<16x32xf32>
    %66 = tpu.matmul %63, %65, %cst_39 {dimension_numbers = #tpu.dot_dimension_numbers<[1], [0], [0], [1], [0, 0, 1, 1], [], []>} : vector<16x8xf32>, vector<8x32xf32>, vector<16x32xf32> -> vector<16x32xf32>
    %67 = vector.extract_strided_slice %61 {offsets = [1, 0, 0], sizes = [1, 16, 8], strides = [1, 1, 1]} : vector<4x16x8xf32> to vector<1x16x8xf32>
    %68 = vector.shape_cast %67 : vector<1x16x8xf32> to vector<16x8xf32>
    %69 = vector.extract_strided_slice %15 {offsets = [1, 0, 0], sizes = [1, 8, 32], strides = [1, 1, 1]} : vector<4x8x32xf32> to vector<1x8x32xf32>
    %70 = vector.shape_cast %69 : vector<1x8x32xf32> to vector<8x32xf32>
    %cst_40 = arith.constant dense<0.000000e+00> : vector<16x32xf32>
    %71 = tpu.matmul %68, %70, %cst_40 {dimension_numbers = #tpu.dot_dimension_numbers<[1], [0], [0], [1], [0, 0, 1, 1], [], []>} : vector<16x8xf32>, vector<8x32xf32>, vector<16x32xf32> -> vector<16x32xf32>
    %72 = arith.addf %66, %71 : vector<16x32xf32>
    %73 = vector.extract_strided_slice %61 {offsets = [2, 0, 0], sizes = [1, 16, 8], strides = [1, 1, 1]} : vector<4x16x8xf32> to vector<1x16x8xf32>
    %74 = vector.shape_cast %73 : vector<1x16x8xf32> to vector<16x8xf32>
    %75 = vector.extract_strided_slice %15 {offsets = [2, 0, 0], sizes = [1, 8, 32], strides = [1, 1, 1]} : vector<4x8x32xf32> to vector<1x8x32xf32>
    %76 = vector.shape_cast %75 : vector<1x8x32xf32> to vector<8x32xf32>
    %cst_41 = arith.constant dense<0.000000e+00> : vector<16x32xf32>
    %77 = tpu.matmul %74, %76, %cst_41 {dimension_numbers = #tpu.dot_dimension_numbers<[1], [0], [0], [1], [0, 0, 1, 1], [], []>} : vector<16x8xf32>, vector<8x32xf32>, vector<16x32xf32> -> vector<16x32xf32>
    %78 = arith.addf %72, %77 : vector<16x32xf32>
    %79 = vector.extract_strided_slice %61 {offsets = [3, 0, 0], sizes = [1, 16, 8], strides = [1, 1, 1]} : vector<4x16x8xf32> to vector<1x16x8xf32>
    %80 = vector.shape_cast %79 : vector<1x16x8xf32> to vector<16x8xf32>
    %81 = vector.extract_strided_slice %15 {offsets = [3, 0, 0], sizes = [1, 8, 32], strides = [1, 1, 1]} : vector<4x8x32xf32> to vector<1x8x32xf32>
    %82 = vector.shape_cast %81 : vector<1x8x32xf32> to vector<8x32xf32>
    %cst_42 = arith.constant dense<0.000000e+00> : vector<16x32xf32>
    %83 = tpu.matmul %80, %82, %cst_42 {dimension_numbers = #tpu.dot_dimension_numbers<[1], [0], [0], [1], [0, 0, 1, 1], [], []>} : vector<16x8xf32>, vector<8x32xf32>, vector<16x32xf32> -> vector<16x32xf32>
    %84 = arith.addf %78, %83 : vector<16x32xf32>
    %85 = vector.broadcast %3 : vector<1x32xf32> to vector<16x32xf32>
    %86 = arith.addf %84, %85 : vector<16x32xf32>
    %87 = arith.addf %86, %0 : vector<16x32xf32>
    %cst_43 = arith.constant dense<0.000000e+00> : vector<16xf32>
    %88 = vector.multi_reduction <add>, %87, %cst_43 [1] : vector<16x32xf32> to vector<16xf32>
    %89 = vector.shape_cast %88 : vector<16xf32> to vector<16x1xf32>
    %cst_44 = arith.constant 3.200000e+01 : f32
    %90 = vector.broadcast %cst_44 : f32 to vector<16x1xf32>
    %91 = arith.divf %89, %90 : vector<16x1xf32>
    %92 = vector.broadcast %91 : vector<16x1xf32> to vector<16x32xf32>
    %93 = arith.subf %87, %92 : vector<16x32xf32>
    %94 = arith.mulf %93, %93 : vector<16x32xf32>
    %cst_45 = arith.constant dense<0.000000e+00> : vector<16xf32>
    %95 = vector.multi_reduction <add>, %94, %cst_45 [1] : vector<16x32xf32> to vector<16xf32>
    %96 = vector.shape_cast %95 : vector<16xf32> to vector<16x1xf32>
    %cst_46 = arith.constant 3.200000e+01 : f32
    %97 = vector.broadcast %cst_46 : f32 to vector<16x1xf32>
    %98 = arith.divf %96, %97 : vector<16x1xf32>
    %99 = vector.broadcast %91 : vector<16x1xf32> to vector<16x32xf32>
    %100 = arith.subf %87, %99 : vector<16x32xf32>
    %cst_47 = arith.constant 9.99999974E-6 : f32
    %101 = vector.broadcast %cst_47 : f32 to vector<16x1xf32>
    %102 = arith.addf %98, %101 : vector<16x1xf32>
    %103 = math.rsqrt %102 : vector<16x1xf32>
    %104 = vector.broadcast %103 : vector<16x1xf32> to vector<16x32xf32>
    %105 = arith.mulf %100, %104 : vector<16x32xf32>
    %106 = vector.broadcast %4 : vector<1x32xf32> to vector<16x32xf32>
    %107 = arith.mulf %105, %106 : vector<16x32xf32>
    %108 = vector.broadcast %5 : vector<1x32xf32> to vector<16x32xf32>
    %109 = arith.addf %107, %108 : vector<16x32xf32>
    %c0_48 = arith.constant 0 : index
    %c0_49 = arith.constant 0 : index
    %c0_50 = arith.constant 0 : index
    %110 = vector.load %arg7[%c0_48, %c0_49, %c0_50] : memref<2x32x64xf32, #tpu.memory_space<vmem>>, vector<1x32x64xf32>
    %111 = vector.shape_cast %110 : vector<1x32x64xf32> to vector<32x64xf32>
    %cst_51 = arith.constant dense<0.000000e+00> : vector<16x64xf32>
    %112 = tpu.matmul %109, %111, %cst_51 {dimension_numbers = #tpu.dot_dimension_numbers<[1], [0], [0], [1], [0, 0, 1, 1], [], []>} : vector<16x32xf32>, vector<32x64xf32>, vector<16x64xf32> -> vector<16x64xf32>
    %113 = vector.broadcast %7 : vector<1x64xf32> to vector<16x64xf32>
    %114 = arith.addf %112, %113 : vector<16x64xf32>
    %cst_52 = arith.constant 5.000000e-01 : f32
    %115 = vector.broadcast %cst_52 : f32 to vector<16x64xf32>
    %116 = arith.mulf %115, %114 : vector<16x64xf32>
    %cst_53 = arith.constant 0.707106769 : f32
    %117 = vector.broadcast %cst_53 : f32 to vector<16x64xf32>
    %118 = arith.mulf %114, %117 : vector<16x64xf32>
    %119 = math.erf %118 : vector<16x64xf32>
    %cst_54 = arith.constant 1.000000e+00 : f32
    %120 = vector.broadcast %cst_54 : f32 to vector<16x64xf32>
    %121 = arith.addf %120, %119 : vector<16x64xf32>
    %122 = arith.mulf %116, %121 : vector<16x64xf32>
    %c0_55 = arith.constant 0 : index
    %c0_56 = arith.constant 0 : index
    %c0_57 = arith.constant 0 : index
    %123 = vector.load %arg8[%c0_55, %c0_56, %c0_57] : memref<2x64x32xf32, #tpu.memory_space<vmem>>, vector<1x64x32xf32>
    %124 = vector.shape_cast %123 : vector<1x64x32xf32> to vector<64x32xf32>
    %cst_58 = arith.constant dense<0.000000e+00> : vector<16x32xf32>
    %125 = tpu.matmul %122, %124, %cst_58 {dimension_numbers = #tpu.dot_dimension_numbers<[1], [0], [0], [1], [0, 0, 1, 1], [], []>} : vector<16x64xf32>, vector<64x32xf32>, vector<16x32xf32> -> vector<16x32xf32>
    %126 = vector.broadcast %6 : vector<1x32xf32> to vector<16x32xf32>
    %127 = arith.addf %125, %126 : vector<16x32xf32>
    %128 = arith.addf %127, %87 : vector<16x32xf32>
    %c6 = arith.constant 6 : index
    %c0_59 = arith.constant 0 : index
    %129 = vector.load %arg1[%c6, %c0_59] : memref<14x32xf32, #tpu.memory_space<vmem>>, vector<1x32xf32>
    %c7 = arith.constant 7 : index
    %c0_60 = arith.constant 0 : index
    %130 = vector.load %arg1[%c7, %c0_60] : memref<14x32xf32, #tpu.memory_space<vmem>>, vector<1x32xf32>
    %c8 = arith.constant 8 : index
    %c0_61 = arith.constant 0 : index
    %131 = vector.load %arg1[%c8, %c0_61] : memref<14x32xf32, #tpu.memory_space<vmem>>, vector<1x32xf32>
    %c9 = arith.constant 9 : index
    %c0_62 = arith.constant 0 : index
    %132 = vector.load %arg1[%c9, %c0_62] : memref<14x32xf32, #tpu.memory_space<vmem>>, vector<1x32xf32>
    %c10 = arith.constant 10 : index
    %c0_63 = arith.constant 0 : index
    %133 = vector.load %arg1[%c10, %c0_63] : memref<14x32xf32, #tpu.memory_space<vmem>>, vector<1x32xf32>
    %c11 = arith.constant 11 : index
    %c0_64 = arith.constant 0 : index
    %134 = vector.load %arg1[%c11, %c0_64] : memref<14x32xf32, #tpu.memory_space<vmem>>, vector<1x32xf32>
    %c1_65 = arith.constant 1 : index
    %c0_66 = arith.constant 0 : index
    %135 = vector.load %arg2[%c1_65, %c0_66] : memref<2x64xf32, #tpu.memory_space<vmem>>, vector<1x64xf32>
    %c1_67 = arith.constant 1 : index
    %c0_68 = arith.constant 0 : index
    %c0_69 = arith.constant 0 : index
    %c0_70 = arith.constant 0 : index
    %136 = vector.load %arg3[%c1_67, %c0_68, %c0_69, %c0_70] : memref<2x4x32x8xf32, #tpu.memory_space<vmem>>, vector<1x4x32x8xf32>
    %137 = vector.shape_cast %136 : vector<1x4x32x8xf32> to vector<4x32x8xf32>
    %c1_71 = arith.constant 1 : index
    %c0_72 = arith.constant 0 : index
    %c0_73 = arith.constant 0 : index
    %c0_74 = arith.constant 0 : index
    %138 = vector.load %arg4[%c1_71, %c0_72, %c0_73, %c0_74] : memref<2x4x32x8xf32, #tpu.memory_space<vmem>>, vector<1x4x32x8xf32>
    %139 = vector.shape_cast %138 : vector<1x4x32x8xf32> to vector<4x32x8xf32>
    %c1_75 = arith.constant 1 : index
    %c0_76 = arith.constant 0 : index
    %c0_77 = arith.constant 0 : index
    %c0_78 = arith.constant 0 : index
    %140 = vector.load %arg5[%c1_75, %c0_76, %c0_77, %c0_78] : memref<2x4x32x8xf32, #tpu.memory_space<vmem>>, vector<1x4x32x8xf32>
    %141 = vector.shape_cast %140 : vector<1x4x32x8xf32> to vector<4x32x8xf32>
    %c1_79 = arith.constant 1 : index
    %c0_80 = arith.constant 0 : index
    %c0_81 = arith.constant 0 : index
    %c0_82 = arith.constant 0 : index
    %142 = vector.load %arg6[%c1_79, %c0_80, %c0_81, %c0_82] : memref<2x4x8x32xf32, #tpu.memory_space<vmem>>, vector<1x4x8x32xf32>
    %143 = vector.shape_cast %142 : vector<1x4x8x32xf32> to vector<4x8x32xf32>
    %cst_83 = arith.constant dense<0.000000e+00> : vector<16xf32>
    %144 = vector.multi_reduction <add>, %128, %cst_83 [1] : vector<16x32xf32> to vector<16xf32>
    %145 = vector.shape_cast %144 : vector<16xf32> to vector<16x1xf32>
    %cst_84 = arith.constant 3.200000e+01 : f32
    %146 = vector.broadcast %cst_84 : f32 to vector<16x1xf32>
    %147 = arith.divf %145, %146 : vector<16x1xf32>
    %148 = vector.broadcast %147 : vector<16x1xf32> to vector<16x32xf32>
    %149 = arith.subf %128, %148 : vector<16x32xf32>
    %150 = arith.mulf %149, %149 : vector<16x32xf32>
    %cst_85 = arith.constant dense<0.000000e+00> : vector<16xf32>
    %151 = vector.multi_reduction <add>, %150, %cst_85 [1] : vector<16x32xf32> to vector<16xf32>
    %152 = vector.shape_cast %151 : vector<16xf32> to vector<16x1xf32>
    %cst_86 = arith.constant 3.200000e+01 : f32
    %153 = vector.broadcast %cst_86 : f32 to vector<16x1xf32>
    %154 = arith.divf %152, %153 : vector<16x1xf32>
    %155 = vector.broadcast %147 : vector<16x1xf32> to vector<16x32xf32>
    %156 = arith.subf %128, %155 : vector<16x32xf32>
    %cst_87 = arith.constant 9.99999974E-6 : f32
    %157 = vector.broadcast %cst_87 : f32 to vector<16x1xf32>
    %158 = arith.addf %154, %157 : vector<16x1xf32>
    %159 = math.rsqrt %158 : vector<16x1xf32>
    %160 = vector.broadcast %159 : vector<16x1xf32> to vector<16x32xf32>
    %161 = arith.mulf %156, %160 : vector<16x32xf32>
    %162 = vector.broadcast %129 : vector<1x32xf32> to vector<16x32xf32>
    %163 = arith.mulf %161, %162 : vector<16x32xf32>
    %164 = vector.broadcast %130 : vector<1x32xf32> to vector<16x32xf32>
    %165 = arith.addf %163, %164 : vector<16x32xf32>
    %166 = vector.shape_cast %165 : vector<16x32xf32> to vector<1x16x32xf32>
    %167 = vector.broadcast %166 : vector<1x16x32xf32> to vector<4x16x32xf32>
    "tpu.trace_start"() <{level = 10 : i32, message = "hrd,hde->hre"}> : () -> ()
    %cst_88 = arith.constant dense<0.000000e+00> : vector<4x16x8xf32>
    %168 = tpu.matmul %167, %137, %cst_88 {dimension_numbers = #tpu.dot_dimension_numbers<[2], [1], [1], [2], [0, 0, 0, 1, 1, 2], [0], [0]>} : vector<4x16x32xf32>, vector<4x32x8xf32>, vector<4x16x8xf32> -> vector<4x16x8xf32>
    %cst_89 = arith.constant dense<0.000000e+00> : vector<4x16x8xf32>
    %169 = tpu.matmul %167, %139, %cst_89 {dimension_numbers = #tpu.dot_dimension_numbers<[2], [1], [1], [2], [0, 0, 0, 1, 1, 2], [0], [0]>} : vector<4x16x32xf32>, vector<4x32x8xf32>, vector<4x16x8xf32> -> vector<4x16x8xf32>
    %cst_90 = arith.constant dense<0.000000e+00> : vector<4x16x8xf32>
    %170 = tpu.matmul %167, %141, %cst_90 {dimension_numbers = #tpu.dot_dimension_numbers<[2], [1], [1], [2], [0, 0, 0, 1, 1, 2], [0], [0]>} : vector<4x16x32xf32>, vector<4x32x8xf32>, vector<4x16x8xf32> -> vector<4x16x8xf32>
    "tpu.trace_stop"() : () -> ()
    %171 = vector.shape_cast %168 : vector<4x16x8xf32> to vector<8x8x8xf32>
    %172 = vector.shape_cast %169 : vector<4x16x8xf32> to vector<8x8x8xf32>
    %173 = vector.shape_cast %170 : vector<4x16x8xf32> to vector<8x8x8xf32>
    "tpu.trace_start"() <{level = 10 : i32, message = "gnd,gmd->gnm"}> : () -> ()
    %cst_91 = arith.constant dense<0.000000e+00> : vector<8x8x8xf32>
    %174 = tpu.matmul %171, %172, %cst_91 {dimension_numbers = #tpu.dot_dimension_numbers<[2], [2], [1], [1], [0, 0, 0, 1, 1, 1], [0], [0]>} : vector<8x8x8xf32>, vector<8x8x8xf32>, vector<8x8x8xf32> -> vector<8x8x8xf32>
    "tpu.trace_stop"() : () -> ()
    %cst_92 = arith.constant 0.353553385 : f32
    %175 = vector.broadcast %cst_92 : f32 to vector<8x8x8xf32>
    %176 = arith.mulf %174, %175 : vector<8x8x8xf32>
    %cst_93 = arith.constant dense<0xFF800000> : vector<8x8xf32>
    %177 = vector.multi_reduction <maximumf>, %176, %cst_93 [2] : vector<8x8x8xf32> to vector<8x8xf32>
    %178 = vector.shape_cast %177 : vector<8x8xf32> to vector<8x8x1xf32>
    %179 = vector.broadcast %178 : vector<8x8x1xf32> to vector<8x8x8xf32>
    %180 = arith.subf %176, %179 : vector<8x8x8xf32>
    %181 = math.exp %180 : vector<8x8x8xf32>
    %cst_94 = arith.constant dense<0.000000e+00> : vector<8x8xf32>
    %182 = vector.multi_reduction <add>, %181, %cst_94 [2] : vector<8x8x8xf32> to vector<8x8xf32>
    %183 = vector.shape_cast %182 : vector<8x8xf32> to vector<8x8x1xf32>
    %cst_95 = arith.constant 1.000000e+00 : f32
    %184 = vector.broadcast %cst_95 : f32 to vector<8x8x1xf32>
    %185 = arith.divf %184, %183 : vector<8x8x1xf32>
    %186 = vector.broadcast %185 : vector<8x8x1xf32> to vector<8x8x8xf32>
    %187 = arith.mulf %181, %186 : vector<8x8x8xf32>
    "tpu.trace_start"() <{level = 10 : i32, message = "gnm,gmd->gnd"}> : () -> ()
    %cst_96 = arith.constant dense<0.000000e+00> : vector<8x8x8xf32>
    %188 = tpu.matmul %187, %173, %cst_96 {dimension_numbers = #tpu.dot_dimension_numbers<[2], [1], [1], [2], [0, 0, 0, 1, 1, 2], [0], [0]>} : vector<8x8x8xf32>, vector<8x8x8xf32>, vector<8x8x8xf32> -> vector<8x8x8xf32>
    "tpu.trace_stop"() : () -> ()
    %189 = vector.shape_cast %188 : vector<8x8x8xf32> to vector<4x16x8xf32>
    %190 = vector.extract_strided_slice %189 {offsets = [0, 0, 0], sizes = [1, 16, 8], strides = [1, 1, 1]} : vector<4x16x8xf32> to vector<1x16x8xf32>
    %191 = vector.shape_cast %190 : vector<1x16x8xf32> to vector<16x8xf32>
    %192 = vector.extract_strided_slice %143 {offsets = [0, 0, 0], sizes = [1, 8, 32], strides = [1, 1, 1]} : vector<4x8x32xf32> to vector<1x8x32xf32>
    %193 = vector.shape_cast %192 : vector<1x8x32xf32> to vector<8x32xf32>
    %cst_97 = arith.constant dense<0.000000e+00> : vector<16x32xf32>
    %194 = tpu.matmul %191, %193, %cst_97 {dimension_numbers = #tpu.dot_dimension_numbers<[1], [0], [0], [1], [0, 0, 1, 1], [], []>} : vector<16x8xf32>, vector<8x32xf32>, vector<16x32xf32> -> vector<16x32xf32>
    %195 = vector.extract_strided_slice %189 {offsets = [1, 0, 0], sizes = [1, 16, 8], strides = [1, 1, 1]} : vector<4x16x8xf32> to vector<1x16x8xf32>
    %196 = vector.shape_cast %195 : vector<1x16x8xf32> to vector<16x8xf32>
    %197 = vector.extract_strided_slice %143 {offsets = [1, 0, 0], sizes = [1, 8, 32], strides = [1, 1, 1]} : vector<4x8x32xf32> to vector<1x8x32xf32>
    %198 = vector.shape_cast %197 : vector<1x8x32xf32> to vector<8x32xf32>
    %cst_98 = arith.constant dense<0.000000e+00> : vector<16x32xf32>
    %199 = tpu.matmul %196, %198, %cst_98 {dimension_numbers = #tpu.dot_dimension_numbers<[1], [0], [0], [1], [0, 0, 1, 1], [], []>} : vector<16x8xf32>, vector<8x32xf32>, vector<16x32xf32> -> vector<16x32xf32>
    %200 = arith.addf %194, %199 : vector<16x32xf32>
    %201 = vector.extract_strided_slice %189 {offsets = [2, 0, 0], sizes = [1, 16, 8], strides = [1, 1, 1]} : vector<4x16x8xf32> to vector<1x16x8xf32>
    %202 = vector.shape_cast %201 : vector<1x16x8xf32> to vector<16x8xf32>
    %203 = vector.extract_strided_slice %143 {offsets = [2, 0, 0], sizes = [1, 8, 32], strides = [1, 1, 1]} : vector<4x8x32xf32> to vector<1x8x32xf32>
    %204 = vector.shape_cast %203 : vector<1x8x32xf32> to vector<8x32xf32>
    %cst_99 = arith.constant dense<0.000000e+00> : vector<16x32xf32>
    %205 = tpu.matmul %202, %204, %cst_99 {dimension_numbers = #tpu.dot_dimension_numbers<[1], [0], [0], [1], [0, 0, 1, 1], [], []>} : vector<16x8xf32>, vector<8x32xf32>, vector<16x32xf32> -> vector<16x32xf32>
    %206 = arith.addf %200, %205 : vector<16x32xf32>
    %207 = vector.extract_strided_slice %189 {offsets = [3, 0, 0], sizes = [1, 16, 8], strides = [1, 1, 1]} : vector<4x16x8xf32> to vector<1x16x8xf32>
    %208 = vector.shape_cast %207 : vector<1x16x8xf32> to vector<16x8xf32>
    %209 = vector.extract_strided_slice %143 {offsets = [3, 0, 0], sizes = [1, 8, 32], strides = [1, 1, 1]} : vector<4x8x32xf32> to vector<1x8x32xf32>
    %210 = vector.shape_cast %209 : vector<1x8x32xf32> to vector<8x32xf32>
    %cst_100 = arith.constant dense<0.000000e+00> : vector<16x32xf32>
    %211 = tpu.matmul %208, %210, %cst_100 {dimension_numbers = #tpu.dot_dimension_numbers<[1], [0], [0], [1], [0, 0, 1, 1], [], []>} : vector<16x8xf32>, vector<8x32xf32>, vector<16x32xf32> -> vector<16x32xf32>
    %212 = arith.addf %206, %211 : vector<16x32xf32>
    %213 = vector.broadcast %131 : vector<1x32xf32> to vector<16x32xf32>
    %214 = arith.addf %212, %213 : vector<16x32xf32>
    %215 = arith.addf %214, %128 : vector<16x32xf32>
    %cst_101 = arith.constant dense<0.000000e+00> : vector<16xf32>
    %216 = vector.multi_reduction <add>, %215, %cst_101 [1] : vector<16x32xf32> to vector<16xf32>
    %217 = vector.shape_cast %216 : vector<16xf32> to vector<16x1xf32>
    %cst_102 = arith.constant 3.200000e+01 : f32
    %218 = vector.broadcast %cst_102 : f32 to vector<16x1xf32>
    %219 = arith.divf %217, %218 : vector<16x1xf32>
    %220 = vector.broadcast %219 : vector<16x1xf32> to vector<16x32xf32>
    %221 = arith.subf %215, %220 : vector<16x32xf32>
    %222 = arith.mulf %221, %221 : vector<16x32xf32>
    %cst_103 = arith.constant dense<0.000000e+00> : vector<16xf32>
    %223 = vector.multi_reduction <add>, %222, %cst_103 [1] : vector<16x32xf32> to vector<16xf32>
    %224 = vector.shape_cast %223 : vector<16xf32> to vector<16x1xf32>
    %cst_104 = arith.constant 3.200000e+01 : f32
    %225 = vector.broadcast %cst_104 : f32 to vector<16x1xf32>
    %226 = arith.divf %224, %225 : vector<16x1xf32>
    %227 = vector.broadcast %219 : vector<16x1xf32> to vector<16x32xf32>
    %228 = arith.subf %215, %227 : vector<16x32xf32>
    %cst_105 = arith.constant 9.99999974E-6 : f32
    %229 = vector.broadcast %cst_105 : f32 to vector<16x1xf32>
    %230 = arith.addf %226, %229 : vector<16x1xf32>
    %231 = math.rsqrt %230 : vector<16x1xf32>
    %232 = vector.broadcast %231 : vector<16x1xf32> to vector<16x32xf32>
    %233 = arith.mulf %228, %232 : vector<16x32xf32>
    %234 = vector.broadcast %132 : vector<1x32xf32> to vector<16x32xf32>
    %235 = arith.mulf %233, %234 : vector<16x32xf32>
    %236 = vector.broadcast %133 : vector<1x32xf32> to vector<16x32xf32>
    %237 = arith.addf %235, %236 : vector<16x32xf32>
    %c1_106 = arith.constant 1 : index
    %c0_107 = arith.constant 0 : index
    %c0_108 = arith.constant 0 : index
    %238 = vector.load %arg7[%c1_106, %c0_107, %c0_108] : memref<2x32x64xf32, #tpu.memory_space<vmem>>, vector<1x32x64xf32>
    %239 = vector.shape_cast %238 : vector<1x32x64xf32> to vector<32x64xf32>
    %cst_109 = arith.constant dense<0.000000e+00> : vector<16x64xf32>
    %240 = tpu.matmul %237, %239, %cst_109 {dimension_numbers = #tpu.dot_dimension_numbers<[1], [0], [0], [1], [0, 0, 1, 1], [], []>} : vector<16x32xf32>, vector<32x64xf32>, vector<16x64xf32> -> vector<16x64xf32>
    %241 = vector.broadcast %135 : vector<1x64xf32> to vector<16x64xf32>
    %242 = arith.addf %240, %241 : vector<16x64xf32>
    %cst_110 = arith.constant 5.000000e-01 : f32
    %243 = vector.broadcast %cst_110 : f32 to vector<16x64xf32>
    %244 = arith.mulf %243, %242 : vector<16x64xf32>
    %cst_111 = arith.constant 0.707106769 : f32
    %245 = vector.broadcast %cst_111 : f32 to vector<16x64xf32>
    %246 = arith.mulf %242, %245 : vector<16x64xf32>
    %247 = math.erf %246 : vector<16x64xf32>
    %cst_112 = arith.constant 1.000000e+00 : f32
    %248 = vector.broadcast %cst_112 : f32 to vector<16x64xf32>
    %249 = arith.addf %248, %247 : vector<16x64xf32>
    %250 = arith.mulf %244, %249 : vector<16x64xf32>
    %c1_113 = arith.constant 1 : index
    %c0_114 = arith.constant 0 : index
    %c0_115 = arith.constant 0 : index
    %251 = vector.load %arg8[%c1_113, %c0_114, %c0_115] : memref<2x64x32xf32, #tpu.memory_space<vmem>>, vector<1x64x32xf32>
    %252 = vector.shape_cast %251 : vector<1x64x32xf32> to vector<64x32xf32>
    %cst_116 = arith.constant dense<0.000000e+00> : vector<16x32xf32>
    %253 = tpu.matmul %250, %252, %cst_116 {dimension_numbers = #tpu.dot_dimension_numbers<[1], [0], [0], [1], [0, 0, 1, 1], [], []>} : vector<16x64xf32>, vector<64x32xf32>, vector<16x32xf32> -> vector<16x32xf32>
    %254 = vector.broadcast %134 : vector<1x32xf32> to vector<16x32xf32>
    %255 = arith.addf %253, %254 : vector<16x32xf32>
    %256 = arith.addf %255, %215 : vector<16x32xf32>
    %c12 = arith.constant 12 : index
    %c0_117 = arith.constant 0 : index
    %257 = vector.load %arg1[%c12, %c0_117] : memref<14x32xf32, #tpu.memory_space<vmem>>, vector<1x32xf32>
    %c13 = arith.constant 13 : index
    %c0_118 = arith.constant 0 : index
    %258 = vector.load %arg1[%c13, %c0_118] : memref<14x32xf32, #tpu.memory_space<vmem>>, vector<1x32xf32>
    %cst_119 = arith.constant dense<0.000000e+00> : vector<16xf32>
    %259 = vector.multi_reduction <add>, %256, %cst_119 [1] : vector<16x32xf32> to vector<16xf32>
    %260 = vector.shape_cast %259 : vector<16xf32> to vector<16x1xf32>
    %cst_120 = arith.constant 3.200000e+01 : f32
    %261 = vector.broadcast %cst_120 : f32 to vector<16x1xf32>
    %262 = arith.divf %260, %261 : vector<16x1xf32>
    %263 = vector.broadcast %262 : vector<16x1xf32> to vector<16x32xf32>
    %264 = arith.subf %256, %263 : vector<16x32xf32>
    %265 = arith.mulf %264, %264 : vector<16x32xf32>
    %cst_121 = arith.constant dense<0.000000e+00> : vector<16xf32>
    %266 = vector.multi_reduction <add>, %265, %cst_121 [1] : vector<16x32xf32> to vector<16xf32>
    %267 = vector.shape_cast %266 : vector<16xf32> to vector<16x1xf32>
    %cst_122 = arith.constant 3.200000e+01 : f32
    %268 = vector.broadcast %cst_122 : f32 to vector<16x1xf32>
    %269 = arith.divf %267, %268 : vector<16x1xf32>
    %270 = vector.broadcast %262 : vector<16x1xf32> to vector<16x32xf32>
    %271 = arith.subf %256, %270 : vector<16x32xf32>
    %cst_123 = arith.constant 9.99999974E-6 : f32
    %272 = vector.broadcast %cst_123 : f32 to vector<16x1xf32>
    %273 = arith.addf %269, %272 : vector<16x1xf32>
    %274 = math.rsqrt %273 : vector<16x1xf32>
    %275 = vector.broadcast %274 : vector<16x1xf32> to vector<16x32xf32>
    %276 = arith.mulf %271, %275 : vector<16x32xf32>
    %277 = vector.broadcast %257 : vector<1x32xf32> to vector<16x32xf32>
    %278 = arith.mulf %276, %277 : vector<16x32xf32>
    %279 = vector.broadcast %258 : vector<1x32xf32> to vector<16x32xf32>
    %280 = arith.addf %278, %279 : vector<16x32xf32>
    %c0_124 = arith.constant 0 : index
    %c0_125 = arith.constant 0 : index
    %281 = vector.load %arg9[%c0_124, %c0_125] : memref<16x32xf32, #tpu.memory_space<vmem>>, vector<16x32xf32>
    tpu.vector_store %arg9[%c0_124, %c0_125], %280 {strides = array<i32>} : memref<16x32xf32, #tpu.memory_space<vmem>>, vector<16x32xf32>,
    return
  }
}

</mosaic_0001>

<bundles_post_ra>
// kernel: _transformer_forward.1
= control target key start
LH: loop header
LB: loop body
LE: loop exit
PB: predicated region body
PF: predicated region fallthrough
CT: control target
= control target key end

     0   :  { %vm94_vm0 = vcmask 261120   ;;  %s7842_s0 = inlined_call_operand.vmem [shape: f32[16,32], index: 0, kind: input, shape index: {}]   ;;  %s7843_s1 = inlined_call_operand.vmem [shape: f32[14,32], index: 1, kind: input, shape index: {}]   ;;  %s7844_s2 = inlined_call_operand.vmem [shape: f32[2,64], index: 2, kind: input, shape index: {}]   ;;  %s7845_s3 = inlined_call_operand.vmem [shape: f32[2,4,32,8], index: 3, kind: input, shape index: {}]   ;;  %s7846_s4 = inlined_call_operand.vmem [shape: f32[2,4,32,8], index: 4, kind: input, shape index: {}]   ;;  %s7847_s5 = inlined_call_operand.vmem [shape: f32[2,4,32,8], index: 5, kind: input, shape index: {}]   ;;  %s7848_s6 = inlined_call_operand.vmem [shape: f32[2,4,8,32], index: 6, kind: input, shape index: {}]   ;;  %s7849_s7 = inlined_call_operand.vmem [shape: f32[2,32,64], index: 7, kind: input, shape index: {}]   ;;  %s7850_s8 = inlined_call_operand.vmem [shape: f32[2,64,32], index: 8, kind: input, shape index: {}]   ;;  %s7851_s9 = inlined_call_operand.hbm [shape: f32[16,32], index: 9, kind: output, shape index: {}]  }
   0x1   :  { %v7002_v0 = vld [vmem:[%s7842_s0] sm:$0xff]  ;;  %v7007_v1 = vld [vmem:[%s7842_s0 + $0x8] sm:$0xff] }
   0x2   :  { %14 = vsyncpa [#allocation3], 0  ;;  %v95_v2 = vsel %vm94_vm0, %v7002_v0, 0.0  ;;  %v98_v3 = vsel %vm94_vm0, %v7007_v1, 0.0  ;;  %v45_v14 = vld [vmem:[%s7845_s3 + $0x18] sm:$0xff]  ;;  %v44_v16 = vld [vmem:[%s7845_s3 + $0x10] sm:$0xff] }
   0x3   :  { %96 = vadd.xlane.f32.xlu0 %v95_v2  ;;  %v49_v15 = vld [vmem:[%s7845_s3 + $0x38] sm:$0xff]  ;;  %6301 = vmatprep.subr.mxu0 %v45_v14  ;;  %v48_v17 = vld [vmem:[%s7845_s3 + $0x30] sm:$0xff]  ;;  %v43_v18 = vld [vmem:[%s7845_s3 + $0x8] sm:$0xff]  ;;  %vm6945_vm1 = vmmov 0   ;;  %vm1040_vm2 = vcmask 64512   ;;  %vm2822_vm3 = vcmask 523264  }
   0x4   :  { %6312 = vmatprep.subr.mxu1 %v49_v15  ;;  %6302 = vmatpush3.msra.mxu0 %v45_v14  ;;  %v47_v19 = vld [vmem:[%s7845_s3 + $0x28] sm:$0xff]  ;;  %v42_v20 = vld [vmem:[%s7845_s3] sm:$0xff]  ;;  %v53_v22 = vld [vmem:[%s7845_s3 + $0x58] sm:$0xff]  ;;  %s6946_s22 = smov [#allocation2]  }
   0x5   :  { %6313 = vmatpush3.msra.mxu1 %v49_v15  ;;  %6303 = vmatprep.subr.mxu0 %v44_v16  ;;  %v46_v21 = vld [vmem:[%s7845_s3 + $0x20] sm:$0xff]  ;;  %v57_v23 = vld [vmem:[%s7845_s3 + $0x78] sm:$0xff]  ;;  %v52_v40 = vld [vmem:[%s7845_s3 + $0x50] sm:$0xff]  ;;  %s5826_s23 = sshll.u32 %s6946_s22, 4  ;;  %s5827_s23 = int_to_ptr.vmem [resolvable:$true] %s5826_s23 }
   0x6   :  { %6314 = vmatprep.subr.mxu1 %v48_v17  ;;  %6304 = vmatpush3.msra.mxu0 %v44_v16  ;;  %v5837_v31 = vld [vmem:[%s7843_s1] ss:$0 sm:$0xff]  ;;  %v5838_v33 = vld [vmem:[%s7843_s1 + $0x1] ss:$0 sm:$0xff]  ;;  %v56_v41 = vld [vmem:[%s7845_s3 + $0x70] sm:$0xff]  ;;  %v6944_v16 = vmov 0.0   ;;  %p6927_p1 = scmp.lt.s32.totalorder %s5827_s23, %s5827_s23 }
   0x7   :  { %99 = vadd.xlane.f32.xlu0 %v98_v3  ;;  %6315 = vmatpush3.msra.mxu1 %v48_v17  ;;  %v51_v42 = vld [vmem:[%s7845_s3 + $0x48] sm:$0xff]  ;;  %v50_v44 = vld [vmem:[%s7845_s3 + $0x40] sm:$0xff]  ;;  %v61_v46 = vld [vmem:[%s7846_s4 + $0x18] sm:$0xff]  ;;  %s6922_s24 = scalar_lea.vmem %s5827_s23, 256 }
   0x8   :  { %6305 = vmatprep.subr.mxu0 %v43_v18  ;;  %6316 = vmatprep.subr.mxu1 %v47_v19  ;;  %v55_v43 = vld [vmem:[%s7845_s3 + $0x68] sm:$0xff]  ;;  %v54_v45 = vld [vmem:[%s7845_s3 + $0x60] sm:$0xff]  ;;  %v65_v47 = vld [vmem:[%s7846_s4 + $0x38] sm:$0xff]  ;;  %p6923_p0 = scmp.ne.s32.totalorder %s5827_s23, %s6922_s24  ;;  %p6928_p2 = scmp.lt.s32.totalorder %s6922_s24, %s6922_s24 }
   0x9   :  { %6306 = vmatpush3.msra.mxu0 %v43_v18  ;;  %6317 = vmatpush3.msra.mxu1 %v47_v19  ;;  %v60_v48 = vld [vmem:[%s7846_s4 + $0x10] sm:$0xff]  ;;  %v59_v50 = vld [vmem:[%s7846_s4 + $0x8] sm:$0xff]  ;;  %v58_v52 = vld [vmem:[%s7846_s4] sm:$0xff] }
   0xa   :  { %6307 = vmatprep.subr.mxu0 %v42_v20  ;;  %6318 = vmatprep.subr.mxu1 %v46_v21  ;;  %v64_v49 = vld [vmem:[%s7846_s4 + $0x30] sm:$0xff]  ;;  %v63_v51 = vld [vmem:[%s7846_s4 + $0x28] sm:$0xff]  ;;  %v62_v53 = vld [vmem:[%s7846_s4 + $0x20] sm:$0xff]  ;;  %p6929_p3 = por %p6928_p2, %p6927_p1 }
   0xb   :  { %6308 = vmatpush3.msra.mxu0 %v42_v20  ;;  %6319 = vmatpush3.msra.mxu1 %v46_v21  ;;  %v69_v54 = vld [vmem:[%s7846_s4 + $0x58] sm:$0xff]  ;;  %v68_v56 = vld [vmem:[%s7846_s4 + $0x50] sm:$0xff]  ;;  %v67_v58 = vld [vmem:[%s7846_s4 + $0x48] sm:$0xff] }
   0xc   :  { %6323 = vmatprep.subr.mxu0 %v53_v22  ;;  %6334 = vmatprep.subr.mxu1 %v57_v23  ;;  %v73_v55 = vld [vmem:[%s7846_s4 + $0x78] sm:$0xff]  ;;  %v72_v57 = vld [vmem:[%s7846_s4 + $0x70] sm:$0xff]  ;;  %v71_v59 = vld [vmem:[%s7846_s4 + $0x68] sm:$0xff]  ;;  %p6930_p4 = pnand %p6929_p3, %p6923_p0 }
   0xd   :  { %v66_v60 = vld [vmem:[%s7846_s4 + $0x40] sm:$0xff]  ;;  %v77_v62 = vld [vmem:[%s7847_s5 + $0x18] sm:$0xff]  ;;  %v76_v2 = vld [vmem:[%s7847_s5 + $0x10] sm:$0xff] }
   0xe   :  { %v70_v61 = vld [vmem:[%s7846_s4 + $0x60] sm:$0xff]  ;;  %v81_v63 = vld [vmem:[%s7847_s5 + $0x38] sm:$0xff]  ;;  %v80_v3 = vld [vmem:[%s7847_s5 + $0x30] sm:$0xff] }
   0xf   :  { %v82_v14 = vld [vmem:[%s7847_s5 + $0x40] sm:$0xff] }
  0x10   :  { %v86_v15 = vld [vmem:[%s7847_s5 + $0x60] sm:$0xff] }
  0x8c   :  { %v97_v4 = vpop.xlane.xlu0 %96 }
  0x8d   :  { %v102_v5 = vmul.f32 0.03125, %v97_v4  ;;  %v75_v4 = vld [vmem:[%s7847_s5 + $0x8] sm:$0xff] }
  0x8f   :  { %v104_v6 = vsub.f32 %v7002_v0, %v102_v5  ;;  %v79_v5 = vld [vmem:[%s7847_s5 + $0x28] sm:$0xff] }
  0x90   :  { %v100_v7 = vpop.xlane.xlu0 %99 }
  0x91   :  { %v103_v8 = vmul.f32 0.03125, %v100_v7  ;;  %v106_v9 = vmul.f32 %v104_v6, %v104_v6  ;;  %v78_v7 = vld [vmem:[%s7847_s5 + $0x20] sm:$0xff] }
  0x93   :  { %v105_v10 = vsub.f32 %v7007_v1, %v103_v8  ;;  %v108_v11 = vsel %vm94_vm0, %v106_v9, 0.0  ;;  %v85_v8 = vld [vmem:[%s7847_s5 + $0x58] sm:$0xff] }
  0x94   :  { %109 = vadd.xlane.f32.xlu1 %v108_v11  ;;  %v89_v9 = vld [vmem:[%s7847_s5 + $0x78] sm:$0xff]  ;;  %v88_v11 = vld [vmem:[%s7847_s5 + $0x70] sm:$0xff] }
  0x95   :  { %v107_v12 = vmul.f32 %v105_v10, %v105_v10 }
  0x97   :  { %v111_v13 = vsel %vm94_vm0, %v107_v12, 0.0  ;;  %v83_v12 = vld [vmem:[%s7847_s5 + $0x48] sm:$0xff] }
  0x98   :  { %112 = vadd.xlane.f32.xlu1 %v111_v13  ;;  %v87_v13 = vld [vmem:[%s7847_s5 + $0x68] sm:$0xff] }
 0x11d   :  { %v110_v24 = vpop.xlane.xlu1 %109 }
 0x11e   :  { %v114_v25 = vmul.f32 0.03125, %v110_v24 }
 0x120   :  { %v116_v26 = vadd.f32 1e-05, %v114_v25 }
 0x121   :  { %v113_v27 = vpop.xlane.xlu1 %112 }
 0x122   :  { %6830 = vrsqrt.f32 %v116_v26  ;;  %v115_v28 = vmul.f32 0.03125, %v113_v27 }
 0x124   :  { %v117_v29 = vadd.f32 1e-05, %v115_v28 }
 0x126   :  { %6832 = vrsqrt.f32 %v117_v29 }
 0x12f   :  { %v6831_v30 = vpop.eup %6830 }
 0x130   :  { %v120_v32 = vmul.f32 %v6831_v30, %v104_v6  ;;  %v74_v6 = vld [vmem:[%s7847_s5] sm:$0xff] }
 0x132   :  { %v126_v34 = vmul.f32 %v5837_v31, %v120_v32 }
 0x133   :  { %v6833_v35 = vpop.eup %6832 }
 0x134   :  { %v7053_v36 = vadd.f32 %v5838_v33, %v126_v34  ;;  %v121_v37 = vmul.f32 %v6833_v35, %v105_v10  ;;  %v84_v10 = vld [vmem:[%s7847_s5 + $0x50] sm:$0xff] }
 0x136   :  { %v127_v38 = vmul.f32 %v5837_v31, %v121_v37  ;;  %6309 = vmatprep.mubr.msk.f32.mxu0 %vm94_vm0, %v7053_v36  ;;  %6320 = vmatprep.mubr.msk.f32.mxu1 %vm94_vm0, %v7053_v36 }
 0x138   :  { %v7059_v39 = vadd.f32 %v5838_v33, %v127_v38 }
 0x13a   :  { %6310 = vmatmul.mubr.msk.f32.vlgmr.msra.gmra.mxu0 %vm94_vm0, %v7059_v39  ;;  %6321 = vmatmul.mubr.msk.f32.vlgmr.msra.gmra.mxu1 %vm94_vm0, %v7059_v39 }
 0x13b   :  { %6324 = vmatpush3.msra.mxu0 %v53_v22  ;;  %6335 = vmatpush3.msra.mxu1 %v57_v23 }
 0x13c   :  { %6325 = vmatprep.subr.mxu0 %v52_v40  ;;  %6331 = vmatprep.mubr.msk.f32.mxu0 %vm94_vm0, %v7053_v36 }
 0x13d   :  { %6336 = vmatprep.subr.mxu1 %v56_v41  ;;  %6342 = vmatprep.mubr.msk.f32.mxu1 %vm94_vm0, %v7053_v36 }
 0x13e   :  { %6326 = vmatpush3.msra.mxu0 %v52_v40  ;;  %6337 = vmatpush3.msra.mxu1 %v56_v41 }
 0x13f   :  { %6327 = vmatprep.subr.mxu0 %v51_v42  ;;  %6338 = vmatprep.subr.mxu1 %v55_v43 }
 0x140   :  { %6328 = vmatpush3.msra.mxu0 %v51_v42  ;;  %6339 = vmatpush3.msra.mxu1 %v55_v43 }
 0x141   :  { %6329 = vmatprep.subr.mxu0 %v50_v44  ;;  %6340 = vmatprep.subr.mxu1 %v54_v45 }
 0x142   :  { %6330 = vmatpush3.msra.mxu0 %v50_v44  ;;  %6341 = vmatpush3.msra.mxu1 %v54_v45 }
 0x143   :  { %6332 = vmatmul.mubr.msk.f32.vlgmr.msra.gmra.mxu0 %vm94_vm0, %v7059_v39  ;;  %6343 = vmatmul.mubr.msk.f32.vlgmr.msra.gmra.mxu1 %vm94_vm0, %v7059_v39 }
 0x144   :  { %6345 = vmatprep.subr.mxu0 %v61_v46  ;;  %6356 = vmatprep.subr.mxu1 %v65_v47 }
 0x145   :  { %6346 = vmatpush3.msra.mxu0 %v61_v46  ;;  %6353 = vmatprep.mubr.msk.f32.mxu0 %vm94_vm0, %v7053_v36 }
 0x146   :  { %6357 = vmatpush3.msra.mxu1 %v65_v47  ;;  %6364 = vmatprep.mubr.msk.f32.mxu1 %vm94_vm0, %v7053_v36 }
 0x147   :  { %6347 = vmatprep.subr.mxu0 %v60_v48  ;;  %6358 = vmatprep.subr.mxu1 %v64_v49 }
 0x148   :  { %6348 = vmatpush3.msra.mxu0 %v60_v48  ;;  %6359 = vmatpush3.msra.mxu1 %v64_v49 }
 0x149   :  { %6349 = vmatprep.subr.mxu0 %v59_v50  ;;  %6360 = vmatprep.subr.mxu1 %v63_v51 }
 0x14a   :  { %6350 = vmatpush3.msra.mxu0 %v59_v50  ;;  %6361 = vmatpush3.msra.mxu1 %v63_v51 }
 0x14b   :  { %6351 = vmatprep.subr.mxu0 %v58_v52  ;;  %6362 = vmatprep.subr.mxu1 %v62_v53 }
 0x14c   :  { %6352 = vmatpush3.msra.mxu0 %v58_v52  ;;  %6363 = vmatpush3.msra.mxu1 %v62_v53 }
 0x14d   :  { %6354 = vmatmul.mubr.msk.f32.vlgmr.msra.gmra.mxu0 %vm94_vm0, %v7059_v39  ;;  %6365 = vmatmul.mubr.msk.f32.vlgmr.msra.gmra.mxu1 %vm94_vm0, %v7059_v39 }
 0x14e   :  { %6367 = vmatprep.subr.mxu0 %v69_v54  ;;  %6378 = vmatprep.subr.mxu1 %v73_v55 }
 0x14f   :  { %6368 = vmatpush3.msra.mxu0 %v69_v54  ;;  %6375 = vmatprep.mubr.msk.f32.mxu0 %vm94_vm0, %v7053_v36 }
 0x150   :  { %6379 = vmatpush3.msra.mxu1 %v73_v55  ;;  %6386 = vmatprep.mubr.msk.f32.mxu1 %vm94_vm0, %v7053_v36 }
 0x151   :  { %6369 = vmatprep.subr.mxu0 %v68_v56  ;;  %6380 = vmatprep.subr.mxu1 %v72_v57 }
 0x152   :  { %6370 = vmatpush3.msra.mxu0 %v68_v56  ;;  %6381 = vmatpush3.msra.mxu1 %v72_v57 }
 0x153   :  { %6371 = vmatprep.subr.mxu0 %v67_v58  ;;  %6382 = vmatprep.subr.mxu1 %v71_v59 }
 0x154   :  { %6372 = vmatpush3.msra.mxu0 %v67_v58  ;;  %6383 = vmatpush3.msra.mxu1 %v71_v59 }
 0x155   :  { %6373 = vmatprep.subr.mxu0 %v66_v60  ;;  %6384 = vmatprep.subr.mxu1 %v70_v61 }
 0x156   :  { %6374 = vmatpush3.msra.mxu0 %v66_v60  ;;  %6385 = vmatpush3.msra.mxu1 %v70_v61 }
 0x157   :  { %6376 = vmatmul.mubr.msk.f32.vlgmr.msra.gmra.mxu0 %vm94_vm0, %v7059_v39  ;;  %6387 = vmatmul.mubr.msk.f32.vlgmr.msra.gmra.mxu1 %vm94_vm0, %v7059_v39 }
 0x158   :  { %6389 = vmatprep.subr.mxu0 %v77_v62  ;;  %6400 = vmatprep.subr.mxu1 %v81_v63 }
 0x159   :  { %6390 = vmatpush3.msra.mxu0 %v77_v62  ;;  %6397 = vmatprep.mubr.msk.f32.mxu0 %vm94_vm0, %v7053_v36 }
 0x15a   :  { %6401 = vmatpush3.msra.mxu1 %v81_v63  ;;  %6408 = vmatprep.mubr.msk.f32.mxu1 %vm94_vm0, %v7053_v36 }
 0x15b   :  { %6391 = vmatprep.subr.mxu0 %v76_v2  ;;  %6402 = vmatprep.subr.mxu1 %v80_v3 }
 0x15c   :  { %6392 = vmatpush3.msra.mxu0 %v76_v2  ;;  %6403 = vmatpush3.msra.mxu1 %v80_v3 }
 0x15d   :  { %6393 = vmatprep.subr.mxu0 %v75_v4  ;;  %6404 = vmatprep.subr.mxu1 %v79_v5 }
 0x15e   :  { %6394 = vmatpush3.msra.mxu0 %v75_v4  ;;  %6405 = vmatpush3.msra.mxu1 %v79_v5 }
 0x15f   :  { %6395 = vmatprep.subr.mxu0 %v74_v6  ;;  %6406 = vmatprep.subr.mxu1 %v78_v7 }
 0x160   :  { %6396 = vmatpush3.msra.mxu0 %v74_v6  ;;  %6407 = vmatpush3.msra.mxu1 %v78_v7 }
 0x161   :  { %6398 = vmatmul.mubr.msk.f32.vlgmr.msra.gmra.mxu0 %vm94_vm0, %v7059_v39  ;;  %6409 = vmatmul.mubr.msk.f32.vlgmr.msra.gmra.mxu1 %vm94_vm0, %v7059_v39 }
 0x162   :  { %6411 = vmatprep.subr.mxu0 %v85_v8  ;;  %6422 = vmatprep.subr.mxu1 %v89_v9 }
 0x163   :  { %6412 = vmatpush3.msra.mxu0 %v85_v8  ;;  %6419 = vmatprep.mubr.msk.f32.mxu0 %vm94_vm0, %v7053_v36 }
 0x164   :  { %6423 = vmatpush3.msra.mxu1 %v89_v9  ;;  %6430 = vmatprep.mubr.msk.f32.mxu1 %vm94_vm0, %v7053_v36 }
 0x165   :  { %6413 = vmatprep.subr.mxu0 %v84_v10  ;;  %6424 = vmatprep.subr.mxu1 %v88_v11 }
 0x166   :  { %6414 = vmatpush3.msra.mxu0 %v84_v10  ;;  %6425 = vmatpush3.msra.mxu1 %v88_v11 }
 0x167   :  { %6415 = vmatprep.subr.mxu0 %v83_v12  ;;  %6426 = vmatprep.subr.mxu1 %v87_v13 }
 0x168   :  { %6416 = vmatpush3.msra.mxu0 %v83_v12  ;;  %6427 = vmatpush3.msra.mxu1 %v87_v13 }
 0x169   :  { %6417 = vmatprep.subr.mxu0 %v82_v14  ;;  %6428 = vmatprep.subr.mxu1 %v86_v15 }
 0x16a   :  { %6418 = vmatpush3.msra.mxu0 %v82_v14  ;;  %6429 = vmatpush3.msra.mxu1 %v86_v15 }
 0x16b   :  { %6420 = vmatmul.mubr.msk.f32.vlgmr.msra.gmra.mxu0 %vm94_vm0, %v7059_v39  ;;  %6431 = vmatmul.mubr.msk.f32.vlgmr.msra.gmra.mxu1 %vm94_vm0, %v7059_v39 }
 0x16c   :  { %6448 = vmatprep.subr.mxu1 %v6944_v16  ;;  %6433 = vmatprep.subr.mxu0 %v6944_v16 }
 0x16d   :  { %6450 = vmatprep.mubr.msk.f32.mxu1 %vm6945_vm1, %v6944_v16  ;;  %6435 = vmatprep.mubr.msk.f32.mxu0 %vm6945_vm1, %v6944_v16 }
 0x1fa   :  { %v6311_v17 = vpop.f32.mrf.mxu0  ;;  %v6322_v18 = vpop.f32.mrf.mxu1 }
 0x1fc   :  { %v206_v19 = vpop.f32.mrf.mxu0  ;;  %v281_v20 = vpop.f32.mrf.mxu1 }
 0x203   :  { %v6333_v21 = vpop.f32.mrf.mxu0  ;;  %v6344_v22 = vpop.f32.mrf.mxu1 }
 0x205   :  { %v356_v23 = vpop.f32.mrf.mxu0  ;;  %v431_v24 = vpop.f32.mrf.mxu1 }
 0x20d   :  { %v6355_v25 = vpop.f32.mrf.mxu0  ;;  %v6366_v26 = vpop.f32.mrf.mxu1 }
 0x20e   :  { %6449 = vmatpush3.xpose.msk.msra.mxu1 %vm1040_vm2, %v6366_v26 }
 0x20f   :  { %v506_v27 = vpop.f32.mrf.mxu0  ;;  %6458 = vmatprep.subr.mxu1 %v6944_v16  ;;  %v581_v28 = vpop.f32.mrf.mxu1 }
 0x210   :  { %6434 = vmatpush3.xpose.msk.msra.mxu0 %vm1040_vm2, %v506_v27 }
 0x211   :  { %6451 = vmatmul.mubr.msk.f32.vlgmr.msra.gmra.mxu1 %vm1040_vm2, %v6322_v18  ;;  %6438 = vmatprep.subr.mxu0 %v6944_v16 }
 0x212   :  { %6460 = vmatprep.mubr.msk.f32.mxu1 %vm6945_vm1, %v6944_v16 }
 0x213   :  { %6436 = vmatmul.mubr.msk.f32.vlgmr.msra.gmra.mxu0 %vm1040_vm2, %v206_v19 }
 0x214   :  { %6439 = vmatpush3.xpose.msk.msra.mxu0 %vm1040_vm2, %v6355_v25  ;;  %6440 = vmatprep.mubr.msk.f32.mxu0 %vm6945_vm1, %v6944_v16 }
 0x215   :  { %6443 = vmatprep.subr.mxu0 %v6944_v16 }
 0x217   :  { %v6377_v29 = vpop.f32.mrf.mxu0  ;;  %6441 = vmatmul.mubr.msk.f32.vlgmr.msra.gmra.mxu0 %vm1040_vm2, %v6311_v17  ;;  %v6388_v30 = vpop.f32.mrf.mxu1 }
 0x218   :  { %6459 = vmatpush3.xpose.msk.msra.mxu1 %vm1040_vm2, %v6377_v29  ;;  %6444 = vmatpush3.xpose.msk.msra.mxu0 %vm1040_vm2, %v581_v28 }
 0x219   :  { %6468 = vmatprep.subr.mxu1 %v6944_v16  ;;  %6445 = vmatprep.mubr.msk.f32.mxu0 %vm6945_vm1, %v6944_v16  ;;  %v656_v31 = vpop.f32.mrf.mxu0  ;;  %v731_v32 = vpop.f32.mrf.mxu1 }
 0x21a   :  { %6453 = vmatprep.subr.mxu0 %v6944_v16 }
 0x21b   :  { %6461 = vmatmul.mubr.msk.f32.vlgmr.msra.gmra.mxu1 %vm1040_vm2, %v6333_v21  ;;  %6446 = vmatmul.mubr.msk.f32.vlgmr.msra.gmra.mxu0 %vm1040_vm2, %v281_v20 }
 0x21c   :  { %6469 = vmatpush3.xpose.msk.msra.mxu1 %vm1040_vm2, %v6388_v30  ;;  %6454 = vmatpush3.xpose.msk.msra.mxu0 %vm1040_vm2, %v656_v31 }
 0x21d   :  { %6470 = vmatprep.mubr.msk.f32.mxu1 %vm6945_vm1, %v6944_v16  ;;  %6478 = vmatprep.subr.mxu1 %v6944_v16 }
 0x21e   :  { %6455 = vmatprep.mubr.msk.f32.mxu0 %vm6945_vm1, %v6944_v16  ;;  %6463 = vmatprep.subr.mxu0 %v6944_v16 }
 0x21f   :  { %6471 = vmatmul.mubr.msk.f32.vlgmr.msra.gmra.mxu1 %vm1040_vm2, %v6344_v22  ;;  %6456 = vmatmul.mubr.msk.f32.vlgmr.msra.gmra.mxu0 %vm1040_vm2, %v356_v23 }
 0x220   :  { %6464 = vmatpush3.xpose.msk.msra.mxu0 %vm1040_vm2, %v731_v32  ;;  %6465 = vmatprep.mubr.msk.f32.mxu0 %vm6945_vm1, %v6944_v16 }
 0x221   :  { %v6399_v33 = vpop.f32.mrf.mxu0  ;;  %6473 = vmatprep.subr.mxu0 %v6944_v16  ;;  %6480 = vmatprep.mubr.msk.f32.mxu1 %vm6945_vm1, %v6944_v16  ;;  %v7267_v35 = vpop.f32.mrf.mxu1 }
 0x222   :  { %6479 = vmatpush3.msra.mxu1 %v6399_v33 }
 0x223   :  { %v806_v34 = vpop.f32.mrf.mxu0  ;;  %6466 = vmatmul.mubr.msk.f32.vlgmr.msra.gmra.mxu0 %vm1040_vm2, %v431_v24  ;;  %6488 = vmatprep.subr.mxu1 %v6944_v16  ;;  %v7269_v36 = vpop.f32.mrf.mxu1 }
 0x224   :  { %6474 = vmatpush3.msra.mxu0 %v806_v34  ;;  %6475 = vmatprep.mubr.msk.f32.mxu0 %vm6945_vm1, %v6944_v16 }
 0x225   :  { %6483 = vmatprep.subr.mxu0 %v6944_v16 }
 0x22b   :  { %v7271_v37 = vpop.f32.mrf.mxu1  ;;  %v7273_v38 = vpop.f32.mrf.mxu0 }
 0x22d   :  { %v7275_v39 = vpop.f32.mrf.mxu1  ;;  %v7277_v40 = vpop.f32.mrf.mxu0 }
 0x2d1   :  { %v1341_v41 = vpop.f32.mrf.mxu1 }
 0x2d2   :  { %v1652_v50 = vmul.f32 0.35355338, %v1341_v41 }
 0x2d3   :  { %v1113_v42 = vpop.f32.mrf.mxu0  ;;  %v6452_v43 = vpop.f32.mrf.mxu1 }
 0x2d4   :  { %v1649_v44 = vmul.f32 0.35355338, %v1113_v42  ;;  %v1666_v58 = vsel %vm1040_vm2, %v1652_v50, -inf }
 0x2d5   :  { %v6437_v45 = vpop.f32.mrf.mxu0 }
 0x2d6   :  { %v1657_v46 = vsel %vm1040_vm2, %v1649_v44, -inf }
 0x2d7   :  { %1658 = vmax.xlane.f32.xlu0 %v1657_v46  ;;  %v1189_v47 = vpop.f32.mrf.mxu0 }
 0x2d8   :  { %v1650_v48 = vmul.f32 0.35355338, %v1189_v47 }
 0x2d9   :  { %v6442_v49 = vpop.f32.mrf.mxu0 }
 0x2da   :  { %v1660_v51 = vsel %vm1040_vm2, %v1650_v48, -inf }
 0x2db   :  { %v1493_v52 = vpop.f32.mrf.mxu1  ;;  %1661 = vmax.xlane.f32.xlu1 %v1660_v51  ;;  %v1265_v53 = vpop.f32.mrf.mxu0 }
 0x2dc   :  { %v1651_v54 = vmul.f32 0.35355338, %v1265_v53  ;;  %v1654_v57 = vmul.f32 0.35355338, %v1493_v52 }
 0x2dd   :  { %v6462_v55 = vpop.f32.mrf.mxu1  ;;  %v6447_v56 = vpop.f32.mrf.mxu0 }
 0x2de   :  { %v1663_v59 = vsel %vm1040_vm2, %v1651_v54, -inf  ;;  %v1672_v4 = vsel %vm1040_vm2, %v1654_v57, -inf }
 0x2df   :  { %v1645_v60 = vpop.f32.mrf.mxu1  ;;  %1667 = vmax.xlane.f32.xlu1 %v1666_v58  ;;  %1664 = vmax.xlane.f32.xlu0 %v1663_v59  ;;  %v1417_v61 = vpop.f32.mrf.mxu0 }
 0x2e0   :  { %v1653_v62 = vmul.f32 0.35355338, %v1417_v61  ;;  %v1656_v3 = vmul.f32 0.35355338, %v1645_v60 }
 0x2e1   :  { %v6472_v63 = vpop.f32.mrf.mxu1  ;;  %v6457_v2 = vpop.f32.mrf.mxu0 }
 0x2e2   :  { %v1669_v5 = vsel %vm1040_vm2, %v1653_v62, -inf  ;;  %v1678_v9 = vsel %vm1040_vm2, %v1656_v3, -inf }
 0x2e3   :  { %1673 = vmax.xlane.f32.xlu1 %v1672_v4  ;;  %1670 = vmax.xlane.f32.xlu0 %v1669_v5  ;;  %v1569_v6 = vpop.f32.mrf.mxu0 }
 0x2e4   :  { %v1655_v7 = vmul.f32 0.35355338, %v1569_v6 }
 0x2e5   :  { %v6467_v8 = vpop.f32.mrf.mxu0 }
 0x2e6   :  { %v1675_v10 = vsel %vm1040_vm2, %v1655_v7, -inf }
 0x2e7   :  { %1679 = vmax.xlane.f32.xlu1 %v1678_v9  ;;  %1676 = vmax.xlane.f32.xlu0 %v1675_v10 }
 0x360   :  { %v1659_v11 = vpop.xlane.xlu0 %1658 }
 0x361   :  { %v1681_v12 = vsub.f32 %v1649_v44, %v1659_v11 }
 0x363   :  { %v1689_v13 = vmul.f32 1.442695, %v1681_v12 }
 0x364   :  { %v1662_v14 = vpop.xlane.xlu1 %1661 }
 0x365   :  { %6834 = vpow2.f32 %v1689_v13  ;;  %v1682_v15 = vsub.f32 %v1650_v48, %v1662_v14 }
 0x367   :  { %v1691_v17 = vmul.f32 1.442695, %v1682_v15 }
 0x368   :  { %v1668_v18 = vpop.xlane.xlu1 %1667  ;;  %v1665_v19 = vpop.xlane.xlu0 %1664 }
 0x369   :  { %6836 = vpow2.f32 %v1691_v17  ;;  %v1684_v20 = vsub.f32 %v1652_v50, %v1668_v18  ;;  %v1683_v21 = vsub.f32 %v1651_v54, %v1665_v19  ;;  %v90_v17 = vld [vmem:[%s7848_s6] sm:$0xff]  ;;  %v93_v18 = vld [vmem:[%s7848_s6 + $0x18] sm:$0xff] }
 0x36b   :  { %v1695_v22 = vmul.f32 1.442695, %v1684_v20  ;;  %v1693_v23 = vmul.f32 1.442695, %v1683_v21 }
 0x36c   :  { %v1674_v24 = vpop.xlane.xlu1 %1673  ;;  %v1671_v25 = vpop.xlane.xlu0 %1670 }
 0x36d   :  { %6838 = vpow2.f32 %v1695_v22  ;;  %v1686_v26 = vsub.f32 %v1654_v57, %v1674_v24  ;;  %v1685_v27 = vsub.f32 %v1653_v62, %v1671_v25 }
 0x36e   :  { %6840 = vpow2.f32 %v1693_v23 }
 0x36f   :  { %v1699_v28 = vmul.f32 1.442695, %v1686_v26  ;;  %v1697_v29 = vmul.f32 1.442695, %v1685_v27 }
 0x370   :  { %v1680_v30 = vpop.xlane.xlu1 %1679  ;;  %v1677_v31 = vpop.xlane.xlu0 %1676 }
 0x371   :  { %6842 = vpow2.f32 %v1699_v28  ;;  %v1688_v32 = vsub.f32 %v1656_v3, %v1680_v30  ;;  %v1687_v33 = vsub.f32 %v1655_v7, %v1677_v31 }
 0x372   :  { %v6835_v34 = vpop.eup %6834  ;;  %6844 = vpow2.f32 %v1697_v29 }
 0x373   :  { %v1703_v41 = vmul.f32 1.442695, %v1688_v32  ;;  %v1701_v42 = vmul.f32 1.442695, %v1687_v33  ;;  %v1705_v43 = vsel %vm1040_vm2, %v6835_v34, 0.0 }
 0x374   :  { %1706 = vadd.xlane.f32.xlu0 %v1705_v43 }
 0x375   :  { %6846 = vpow2.f32 %v1703_v41 }
 0x376   :  { %v6837_v44 = vpop.eup %6836  ;;  %6848 = vpow2.f32 %v1701_v42 }
 0x377   :  { %v1708_v45 = vsel %vm1040_vm2, %v6837_v44, 0.0 }
 0x378   :  { %1709 = vadd.xlane.f32.xlu1 %v1708_v45 }
 0x37a   :  { %v6839_v46 = vpop.eup %6838 }
 0x37b   :  { %v6841_v47 = vpop.eup %6840  ;;  %v1714_v48 = vsel %vm1040_vm2, %v6839_v46, 0.0 }
 0x37c   :  { %1715 = vadd.xlane.f32.xlu1 %v1714_v48  ;;  %v1711_v49 = vsel %vm1040_vm2, %v6841_v47, 0.0 }
 0x37d   :  { %1712 = vadd.xlane.f32.xlu0 %v1711_v49 }
 0x37e   :  { %v6843_v50 = vpop.eup %6842 }
 0x37f   :  { %v6845_v51 = vpop.eup %6844  ;;  %v1720_v52 = vsel %vm1040_vm2, %v6843_v50, 0.0 }
 0x380   :  { %1721 = vadd.xlane.f32.xlu1 %v1720_v52  ;;  %v1717_v53 = vsel %vm1040_vm2, %v6845_v51, 0.0 }
 0x381   :  { %1718 = vadd.xlane.f32.xlu0 %v1717_v53 }
 0x382   :  { %v6847_v54 = vpop.eup %6846 }
 0x383   :  { %v6849_v55 = vpop.eup %6848  ;;  %v1726_v56 = vsel %vm1040_vm2, %v6847_v54, 0.0 }
 0x384   :  { %1727 = vadd.xlane.f32.xlu1 %v1726_v56  ;;  %v1723_v57 = vsel %vm1040_vm2, %v6849_v55, 0.0 }
 0x385   :  { %1724 = vadd.xlane.f32.xlu0 %v1723_v57 }
 0x3fd   :  { %v1707_v58 = vpop.xlane.xlu0 %1706 }
 0x3fe   :  { %6850 = vrcp.f32 %v1707_v58 }
 0x401   :  { %v1710_v59 = vpop.xlane.xlu1 %1709 }
 0x402   :  { %6852 = vrcp.f32 %v1710_v59 }
 0x405   :  { %v1716_v60 = vpop.xlane.xlu1 %1715 }
 0x406   :  { %6854 = vrcp.f32 %v1716_v60  ;;  %v1713_v61 = vpop.xlane.xlu0 %1712 }
 0x407   :  { %6856 = vrcp.f32 %v1713_v61 }
 0x409   :  { %v1722_v62 = vpop.xlane.xlu1 %1721 }
 0x40a   :  { %6858 = vrcp.f32 %v1722_v62  ;;  %v1719_v63 = vpop.xlane.xlu0 %1718 }
 0x40b   :  { %v6851_v2 = vpop.eup %6850  ;;  %6860 = vrcp.f32 %v1719_v63 }
 0x40c   :  { %v1745_v3 = vmul.f32 %v6851_v2, %v6835_v34 }
 0x40d   :  { %v1728_v4 = vpop.xlane.xlu1 %1727 }
 0x40e   :  { %6862 = vrcp.f32 %v1728_v4  ;;  %v1725_v5 = vpop.xlane.xlu0 %1724  ;;  %6476 = vmatmul.mubr.msk.f32.vlgmr.msra.gmra.mxu0 %vm1040_vm2, %v1745_v3 }
 0x40f   :  { %v6853_v6 = vpop.eup %6852  ;;  %6864 = vrcp.f32 %v1725_v5  ;;  %6484 = vmatpush3.msra.mxu0 %v7269_v36  ;;  %6485 = vmatprep.mubr.msk.f32.mxu0 %vm6945_vm1, %v6944_v16 }
 0x410   :  { %v1746_v7 = vmul.f32 %v6853_v6, %v6837_v44  ;;  %6493 = vmatprep.subr.mxu0 %v6944_v16 }
 0x412   :  { %6481 = vmatmul.mubr.msk.f32.vlgmr.msra.gmra.mxu1 %vm1040_vm2, %v1746_v7 }
 0x413   :  { %v6855_v8 = vpop.eup %6854  ;;  %6489 = vmatpush3.msra.mxu1 %v7267_v35  ;;  %6490 = vmatprep.mubr.msk.f32.mxu1 %vm6945_vm1, %v6944_v16 }
 0x414   :  { %v6857_v9 = vpop.eup %6856  ;;  %6498 = vmatprep.subr.mxu1 %v6944_v16  ;;  %v1748_v10 = vmul.f32 %v6855_v8, %v6839_v46  ;;  %v2714_v8 = vld [vmem:[%s7849_s7 + $0x18] sm:$0xff] }
 0x415   :  { %v1747_v11 = vmul.f32 %v6857_v9, %v6841_v47  ;;  %v2713_v9 = vld [vmem:[%s7849_s7 + $0x10] sm:$0xff] }
 0x416   :  { %6491 = vmatmul.mubr.msk.f32.vlgmr.msra.gmra.mxu1 %vm1040_vm2, %v1748_v10  ;;  %v2712_v10 = vld [vmem:[%s7849_s7 + $0x8] sm:$0xff] }
 0x417   :  { %v6859_v36 = vpop.eup %6858  ;;  %6486 = vmatmul.mubr.msk.f32.vlgmr.msra.gmra.mxu0 %vm1040_vm2, %v1747_v11  ;;  %6499 = vmatpush3.msra.mxu1 %v7273_v38  ;;  %v2711_v11 = vld [vmem:[%s7849_s7] sm:$0xff] }
 0x418   :  { %v6861_v12 = vpop.eup %6860  ;;  %6494 = vmatpush3.msra.mxu0 %v7277_v40  ;;  %6495 = vmatprep.mubr.msk.f32.mxu0 %vm6945_vm1, %v6944_v16  ;;  %v1750_v35 = vmul.f32 %v6859_v36, %v6843_v50  ;;  %v5895_v50 = vld [vmem:[%s7843_s1 + $0x2] ss:$0 sm:$0xff] }
 0x419   :  { %6500 = vmatprep.mubr.msk.f32.mxu1 %vm6945_vm1, %v6944_v16  ;;  %6503 = vmatprep.subr.mxu0 %v6944_v16  ;;  %v1749_v13 = vmul.f32 %v6861_v12, %v6845_v51 }
 0x41a   :  { %6508 = vmatprep.subr.mxu1 %v6944_v16  ;;  %6501 = vmatmul.mubr.msk.f32.vlgmr.msra.gmra.mxu1 %vm1040_vm2, %v1750_v35 }
 0x41b   :  { %v6863_v14 = vpop.eup %6862  ;;  %6496 = vmatmul.mubr.msk.f32.vlgmr.msra.gmra.mxu0 %vm1040_vm2, %v1749_v13  ;;  %6509 = vmatpush3.msra.mxu1 %v7271_v37  ;;  %v91_v37 = vld [vmem:[%s7848_s6 + $0x8] sm:$0xff] }
 0x41c   :  { %v6865_v38 = vpop.eup %6864  ;;  %6504 = vmatpush3.msra.mxu0 %v7275_v39  ;;  %6505 = vmatprep.mubr.msk.f32.mxu0 %vm6945_vm1, %v6944_v16  ;;  %v1752_v40 = vmul.f32 %v6863_v14, %v6847_v54  ;;  %v92_v39 = vld [vmem:[%s7848_s6 + $0x10] sm:$0xff] }
 0x41d   :  { %6510 = vmatprep.mubr.msk.f32.mxu1 %vm6945_vm1, %v6944_v16  ;;  %v1751_v15 = vmul.f32 %v6865_v38, %v6849_v55  ;;  %6518 = vmatprep.subr.mxu1 %v90_v17 }
 0x41e   :  { %6511 = vmatmul.mubr.msk.f32.vlgmr.msra.gmra.mxu1 %vm1040_vm2, %v1752_v40  ;;  %6513 = vmatprep.subr.mxu0 %v91_v37 }
 0x41f   :  { %6506 = vmatmul.mubr.msk.f32.vlgmr.msra.gmra.mxu0 %vm1040_vm2, %v1751_v15  ;;  %6519 = vmatpush3.msra.mxu1 %v90_v17  ;;  %v5896_v15 = vld [vmem:[%s7843_s1 + $0x3] ss:$0 sm:$0xff] }
 0x420   :  { %6514 = vmatpush3.msra.mxu0 %v91_v37  ;;  %6528 = vmatprep.subr.mxu1 %v93_v18 }
 0x421   :  { %6523 = vmatprep.subr.mxu0 %v92_v39 }
 0x4ce   :  { %v1822_v19 = vpop.f32.mrf.mxu0 }
 0x4cf   :  { %6520 = vmatprep.mubr.msk.f32.mxu1 %vm1040_vm2, %v1822_v19  ;;  %v5897_v19 = vld [vmem:[%s7843_s1 + $0x4] ss:$0 sm:$0xff] }
 0x4d0   :  { %v6477_v20 = vpop.f32.mrf.mxu0 }
 0x4d2   :  { %v1895_v21 = vpop.f32.mrf.mxu1 }
 0x4d3   :  { %6521 = vmatmul.mubr.msk.f32.vlgmr.msra.gmra.mxu1 %vm1040_vm2, %v1895_v21 }
 0x4d4   :  { %v6482_v22 = vpop.f32.mrf.mxu1  ;;  %6529 = vmatpush3.msra.mxu1 %v93_v18 }
 0x4d6   :  { %v2041_v23 = vpop.f32.mrf.mxu1 }
 0x4d7   :  { %v1968_v24 = vpop.f32.mrf.mxu0 }
 0x4d8   :  { %6515 = vmatprep.mubr.msk.f32.mxu0 %vm1040_vm2, %v1968_v24  ;;  %v6492_v25 = vpop.f32.mrf.mxu1  ;;  %v2816_v24 = vld [vmem:[%s7850_s8 + $0x30] sm:$0xff] }
 0x4d9   :  { %v6487_v26 = vpop.f32.mrf.mxu0  ;;  %6516 = vmatmul.mubr.msk.f32.vlgmr.msra.gmra.mxu0 %vm1040_vm2, %v2041_v23  ;;  %v2817_v23 = vld [vmem:[%s7850_s8 + $0x38] sm:$0xff]  ;;  %v2815_v25 = vld [vmem:[%s7850_s8 + $0x28] sm:$0xff] }
 0x4da   :  { %v2187_v27 = vpop.f32.mrf.mxu1  ;;  %6524 = vmatpush3.msra.mxu0 %v92_v39  ;;  %6544 = vmatprep.subr.mxu1 %v2817_v23  ;;  %v2814_v26 = vld [vmem:[%s7850_s8 + $0x20] sm:$0xff] }
 0x4db   :  { %v2114_v28 = vpop.f32.mrf.mxu0  ;;  %6533 = vmatprep.subr.mxu0 %v2714_v8 }
 0x4dc   :  { %6525 = vmatprep.mubr.msk.f32.mxu0 %vm1040_vm2, %v2114_v28  ;;  %v6502_v29 = vpop.f32.mrf.mxu1  ;;  %v2812_v28 = vld [vmem:[%s7850_s8 + $0x10] sm:$0xff] }
 0x4dd   :  { %v6497_v30 = vpop.f32.mrf.mxu0  ;;  %6526 = vmatmul.mubr.msk.f32.vlgmr.msra.gmra.mxu0 %vm1040_vm2, %v2187_v27  ;;  %v2813_v27 = vld [vmem:[%s7850_s8 + $0x18] sm:$0xff]  ;;  %v2811_v29 = vld [vmem:[%s7850_s8 + $0x8] sm:$0xff] }
 0x4de   :  { %v2333_v31 = vpop.f32.mrf.mxu1  ;;  %6534 = vmatpush3.msra.mxu0 %v2714_v8  ;;  %v2810_v30 = vld [vmem:[%s7850_s8] sm:$0xff]  ;;  %v5915_v8 = vld [vmem:[%s7845_s3 + $0xd8] sm:$0xff] }
 0x4df   :  { %v2260_v32 = vpop.f32.mrf.mxu0  ;;  %6535 = vmatprep.subr.mxu0 %v2713_v9 }
 0x4e0   :  { %6530 = vmatprep.mubr.msk.f32.mxu1 %vm1040_vm2, %v2260_v32  ;;  %v6512_v33 = vpop.f32.mrf.mxu1  ;;  %6536 = vmatpush3.msra.mxu0 %v2713_v9  ;;  %v5906_v9 = vld [vmem:[%s7845_s3 + $0x90] sm:$0xff] }
 0x4e1   :  { %v6507_v34 = vpop.f32.mrf.mxu0  ;;  %6531 = vmatmul.mubr.msk.f32.vlgmr.msra.gmra.mxu1 %vm1040_vm2, %v2333_v31  ;;  %6537 = vmatprep.subr.mxu0 %v2712_v10  ;;  %v5898_v31 = vld [vmem:[%s7844_s2] ss:$0 sm:$0xff] }
 0x4e2   :  { %6538 = vmatpush3.msra.mxu0 %v2712_v10  ;;  %6545 = vmatpush3.msra.mxu1 %v2817_v23  ;;  %v5914_v10 = vld [vmem:[%s7845_s3 + $0xd0] sm:$0xff] }
 0x4e3   :  { %6539 = vmatprep.subr.mxu0 %v2711_v11  ;;  %6546 = vmatprep.subr.mxu1 %v2816_v24 }
 0x4e4   :  { %6540 = vmatpush3.msra.mxu0 %v2711_v11  ;;  %6547 = vmatpush3.msra.mxu1 %v2816_v24  ;;  %v5905_v11 = vld [vmem:[%s7845_s3 + $0x88] sm:$0xff]  ;;  %v5957_v24 = vld [vmem:[%s7843_s1 + $0x7] ss:$0 sm:$0xff] }
 0x4e5   :  { %6548 = vmatprep.subr.mxu1 %v2815_v25 }
 0x4e6   :  { %6549 = vmatpush3.msra.mxu1 %v2815_v25 }
 0x4e7   :  { %6550 = vmatprep.subr.mxu1 %v2814_v26 }
 0x4e8   :  { %6551 = vmatpush3.msra.mxu1 %v2814_v26 }
 0x4e9   :  { %6552 = vmatprep.subr.mxu1 %v2813_v27 }
 0x4ea   :  { %6553 = vmatpush3.msra.mxu1 %v2813_v27 }
 0x4eb   :  { %6554 = vmatprep.subr.mxu1 %v2812_v28 }
 0x4ec   :  { %6555 = vmatpush3.msra.mxu1 %v2812_v28  ;;  %v5910_v28 = vld [vmem:[%s7845_s3 + $0xb0] sm:$0xff] }
 0x4ed   :  { %6556 = vmatprep.subr.mxu1 %v2811_v29 }
 0x4ee   :  { %6557 = vmatpush3.msra.mxu1 %v2811_v29  ;;  %v5922_v29 = vld [vmem:[%s7846_s4 + $0x90] sm:$0xff] }
 0x4ef   :  { %6558 = vmatprep.subr.mxu1 %v2810_v30 }
 0x4f0   :  { %6559 = vmatpush3.msra.mxu1 %v2810_v30  ;;  %v5909_v30 = vld [vmem:[%s7845_s3 + $0xa8] sm:$0xff] }
 0x4f1   :  { %6585 = vmatprep.subr.mxu1 %v5915_v8 }
 0x593   :  { %v6522_v42 = vpop.f32.mrf.mxu1 }
 0x595   :  { %v2490_v46 = vpop.f32.mrf.mxu1 }
 0x599   :  { %v6517_v41 = vpop.f32.mrf.mxu0 }
 0x59a   :  { %v2496_v45 = vadd.f32 %v6522_v42, %v6517_v41 }
 0x59b   :  { %v2409_v43 = vpop.f32.mrf.mxu0 }
 0x59c   :  { %v2491_v48 = vadd.f32 %v2490_v46, %v2409_v43 }
 0x59d   :  { %v6527_v44 = vpop.f32.mrf.mxu0 }
 0x59e   :  { %v2581_v49 = vadd.f32 %v6527_v44, %v2496_v45 }
 0x59f   :  { %v2571_v47 = vpop.f32.mrf.mxu0 }
 0x5a0   :  { %v2580_v52 = vadd.f32 %v2571_v47, %v2491_v48 }
 0x5a1   :  { %v6532_v51 = vpop.f32.mrf.mxu1 }
 0x5a2   :  { %v2664_v53 = vadd.f32 %v6532_v51, %v2581_v49 }
 0x5a3   :  { %v2654_v54 = vpop.f32.mrf.mxu1 }
 0x5a4   :  { %v2670_v55 = vadd.f32 %v5895_v50, %v2664_v53  ;;  %v2663_v56 = vadd.f32 %v2654_v54, %v2580_v52  ;;  %v5901_v52 = vld [vmem:[%s7843_s1 + $0x5] ss:$0 sm:$0xff] }
 0x5a6   :  { %v7349_v57 = vadd.f32 %v2670_v55, %v7007_v1  ;;  %v2669_v58 = vadd.f32 %v5895_v50, %v2663_v56 }
 0x5a8   :  { %v7352_v59 = vadd.f32 %v2669_v58, %v7002_v0  ;;  %v2676_v60 = vsel %vm94_vm0, %v7349_v57, 0.0 }
 0x5a9   :  { %2677 = vadd.xlane.f32.xlu1 %v2676_v60 }
 0x5aa   :  { %v2673_v61 = vsel %vm94_vm0, %v7352_v59, 0.0 }
 0x5ab   :  { %2674 = vadd.xlane.f32.xlu0 %v2673_v61 }
 0x632   :  { %v2678_v62 = vpop.xlane.xlu1 %2677 }
 0x633   :  { %v2680_v63 = vmul.f32 0.03125, %v2678_v62 }
 0x634   :  { %v2675_v2 = vpop.xlane.xlu0 %2674 }
 0x635   :  { %v2682_v3 = vsub.f32 %v7349_v57, %v2680_v63  ;;  %v2679_v4 = vmul.f32 0.03125, %v2675_v2 }
 0x637   :  { %v2681_v1 = vsub.f32 %v7352_v59, %v2679_v4  ;;  %v2684_v5 = vmul.f32 %v2682_v3, %v2682_v3 }
 0x639   :  { %v2688_v0 = vsel %vm94_vm0, %v2684_v5, 0.0  ;;  %v2683_v6 = vmul.f32 %v2681_v1, %v2681_v1 }
 0x63a   :  { %2689 = vadd.xlane.f32.xlu1 %v2688_v0 }
 0x63b   :  { %v2685_v7 = vsel %vm94_vm0, %v2683_v6, 0.0 }
 0x63c   :  { %2686 = vadd.xlane.f32.xlu0 %v2685_v7  ;;  %v5907_v7 = vld [vmem:[%s7845_s3 + $0x98] sm:$0xff] }
 0x63d   :  { %6563 = vmatprep.subr.mxu0 %v5907_v7 }
 0x6c3   :  { %v2690_v36 = vpop.xlane.xlu1 %2689 }
 0x6c4   :  { %v2692_v12 = vmul.f32 0.03125, %v2690_v36  ;;  %v5913_v36 = vld [vmem:[%s7845_s3 + $0xc8] sm:$0xff] }
 0x6c5   :  { %v2687_v35 = vpop.xlane.xlu0 %2686 }
 0x6c6   :  { %v2694_v13 = vadd.f32 1e-05, %v2692_v12  ;;  %v2691_v14 = vmul.f32 0.03125, %v2687_v35  ;;  %v5904_v12 = vld [vmem:[%s7845_s3 + $0x80] sm:$0xff] }
 0x6c7   :  { %v5912_v35 = vld [vmem:[%s7845_s3 + $0xc0] sm:$0xff] }
 0x6c8   :  { %6866 = vrsqrt.f32 %v2694_v13  ;;  %v2693_v38 = vadd.f32 1e-05, %v2691_v14  ;;  %v5911_v13 = vld [vmem:[%s7845_s3 + $0xb8] sm:$0xff] }
 0x6c9   :  { %v5923_v14 = vld [vmem:[%s7846_s4 + $0x98] sm:$0xff] }
 0x6ca   :  { %6868 = vrsqrt.f32 %v2693_v38 }
 0x6d5   :  { %v6867_v40 = vpop.eup %6866 }
 0x6d6   :  { %v2698_v17 = vmul.f32 %v6867_v40, %v2682_v3 }
 0x6d7   :  { %v6869_v37 = vpop.eup %6868 }
 0x6d8   :  { %v2697_v39 = vmul.f32 %v6869_v37, %v2681_v1  ;;  %v2704_v18 = vmul.f32 %v5896_v15, %v2698_v17 }
 0x6da   :  { %v2703_v20 = vmul.f32 %v5896_v15, %v2697_v39  ;;  %v2710_v22 = vadd.f32 %v5897_v19, %v2704_v18 }
 0x6dc   :  { %v2709_v21 = vadd.f32 %v5897_v19, %v2703_v20  ;;  %v5956_v19 = vld [vmem:[%s7843_s1 + $0x6] ss:$0 sm:$0xff] }
 0x6de   :  { %6541 = vmatprep.mubr.msk.f32.mxu0 %vm94_vm0, %v2709_v21 }
 0x6df   :  { %6542 = vmatmul.mubr.msk.f32.vlgmr.msra.gmra.mxu0 %vm94_vm0, %v2710_v22 }
 0x6e0   :  { %6564 = vmatpush3.msra.mxu0 %v5907_v7  ;;  %v5950_v7 = vld [vmem:[%s7847_s5 + $0xf0] sm:$0xff] }
 0x6e1   :  { %6565 = vmatprep.subr.mxu0 %v5906_v9 }
 0x6e2   :  { %6566 = vmatpush3.msra.mxu0 %v5906_v9  ;;  %v5948_v9 = vld [vmem:[%s7847_s5 + $0xe0] sm:$0xff] }
 0x6e3   :  { %6567 = vmatprep.subr.mxu0 %v5905_v11 }
 0x6e4   :  { %6568 = vmatpush3.msra.mxu0 %v5905_v11 }
 0x6e5   :  { %6569 = vmatprep.subr.mxu0 %v5904_v12 }
 0x6e6   :  { %6570 = vmatpush3.msra.mxu0 %v5904_v12 }
 0x6e7   :  { %6574 = vmatprep.subr.mxu0 %v5911_v13 }
 0x79f   :  { %v6543_v32 = vpop.f32.mrf.mxu0 }
 0x7a0   :  { %v2797_v33 = vadd.f32 %v6543_v32, %v5898_v31  ;;  %v5908_v32 = vld [vmem:[%s7845_s3 + $0xa0] sm:$0xff] }
 0x7a1   :  { %v2791_v34 = vpop.f32.mrf.mxu0 }
 0x7a2   :  { %v2803_v41 = vmul.f32 0.70710677, %v2797_v33  ;;  %v2792_v42 = vadd.f32 %v5898_v31, %v2791_v34  ;;  %v2801_v49 = vmul.f32 0.5, %v2797_v33  ;;  %v5921_v31 = vld [vmem:[%s7846_s4 + $0x88] sm:$0xff]  ;;  %v5920_v33 = vld [vmem:[%s7846_s4 + $0x80] sm:$0xff]  ;;  %v5919_v34 = vld [vmem:[%s7845_s3 + $0xf8] sm:$0xff] }
 0x7a4   :  { %6870 = verf.f32 %v2803_v41  ;;  %v2802_v43 = vmul.f32 0.70710677, %v2792_v42  ;;  %v2800_v47 = vmul.f32 0.5, %v2792_v42  ;;  %v5931_v41 = vld [vmem:[%s7846_s4 + $0xd8] sm:$0xff]  ;;  %v5918_v42 = vld [vmem:[%s7845_s3 + $0xf0] sm:$0xff] }
 0x7a6   :  { %6872 = verf.f32 %v2802_v43  ;;  %v5930_v43 = vld [vmem:[%s7846_s4 + $0xd0] sm:$0xff] }
 0x7b1   :  { %v6871_v44 = vpop.eup %6870 }
 0x7b2   :  { %v2807_v46 = vadd.f32 1.0, %v6871_v44  ;;  %v5917_v44 = vld [vmem:[%s7845_s3 + $0xe8] sm:$0xff] }
 0x7b3   :  { %v6873_v45 = vpop.eup %6872 }
 0x7b4   :  { %v2806_v48 = vadd.f32 1.0, %v6873_v45  ;;  %v2809_v51 = vmul.f32 %v2807_v46, %v2801_v49  ;;  %v5929_v45 = vld [vmem:[%s7846_s4 + $0xc8] sm:$0xff]  ;;  %v5916_v46 = vld [vmem:[%s7845_s3 + $0xe0] sm:$0xff]  ;;  %v5939_v49 = vld [vmem:[%s7847_s5 + $0x98] sm:$0xff] }
 0x7b6   :  { %v2808_v50 = vmul.f32 %v2806_v48, %v2800_v47  ;;  %v5928_v47 = vld [vmem:[%s7846_s4 + $0xc0] sm:$0xff]  ;;  %v5927_v48 = vld [vmem:[%s7846_s4 + $0xb8] sm:$0xff] }
 0x7b8   :  { %6560 = vmatprep.mubr.msk.f32.mxu1 %vm2822_vm3, %v2808_v50  ;;  %v5926_v50 = vld [vmem:[%s7846_s4 + $0xb0] sm:$0xff] }
 0x7b9   :  { %6561 = vmatmul.mubr.msk.f32.vlgmr.msra.gmra.mxu1 %vm2822_vm3, %v2809_v51  ;;  %v5938_v51 = vld [vmem:[%s7847_s5 + $0x90] sm:$0xff] }
 0x7ba   :  { %6586 = vmatpush3.msra.mxu1 %v5915_v8  ;;  %v5949_v8 = vld [vmem:[%s7847_s5 + $0xe8] sm:$0xff] }
 0x7bb   :  { %6587 = vmatprep.subr.mxu1 %v5914_v10 }
 0x7bc   :  { %6588 = vmatpush3.msra.mxu1 %v5914_v10 }
 0x7bd   :  { %6589 = vmatprep.subr.mxu1 %v5913_v36 }
 0x7be   :  { %6590 = vmatpush3.msra.mxu1 %v5913_v36 }
 0x7bf   :  { %6591 = vmatprep.subr.mxu1 %v5912_v35 }
 0x7c0   :  { %6592 = vmatpush3.msra.mxu1 %v5912_v35 }
 0x7c1   :  { %6607 = vmatprep.subr.mxu1 %v5923_v14 }
 0x879   :  { %v6562_v53 = vpop.f32.mrf.mxu1 }
 0x87a   :  { %v2901_v54 = vadd.f32 %v6562_v53, %v5901_v52  ;;  %v5937_v53 = vld [vmem:[%s7847_s5 + $0x88] sm:$0xff] }
 0x87b   :  { %v2895_v55 = vpop.f32.mrf.mxu1 }
 0x87c   :  { %v7415_v56 = vadd.f32 %v2901_v54, %v7349_v57  ;;  %v2896_v58 = vadd.f32 %v5901_v52, %v2895_v55  ;;  %v5925_v52 = vld [vmem:[%s7846_s4 + $0xa8] sm:$0xff]  ;;  %v5924_v54 = vld [vmem:[%s7846_s4 + $0xa0] sm:$0xff] }
 0x87d   :  { %v5936_v55 = vld [vmem:[%s7847_s5 + $0x80] sm:$0xff] }
 0x87e   :  { %v7418_v60 = vadd.f32 %v2896_v58, %v7352_v59  ;;  %v2972_v61 = vsel %vm94_vm0, %v7415_v56, 0.0  ;;  %v5935_v58 = vld [vmem:[%s7846_s4 + $0xf8] sm:$0xff] }
 0x87f   :  { %2973 = vadd.xlane.f32.xlu1 %v2972_v61  ;;  %v5947_v61 = vld [vmem:[%s7847_s5 + $0xd8] sm:$0xff] }
 0x880   :  { %v2969_v62 = vsel %vm94_vm0, %v7418_v60, 0.0 }
 0x881   :  { %2970 = vadd.xlane.f32.xlu0 %v2969_v62  ;;  %v5934_v62 = vld [vmem:[%s7846_s4 + $0xf0] sm:$0xff] }
 0x908   :  { %v2974_v63 = vpop.xlane.xlu1 %2973 }
 0x909   :  { %v2976_v2 = vmul.f32 0.03125, %v2974_v63  ;;  %v5946_v63 = vld [vmem:[%s7847_s5 + $0xd0] sm:$0xff] }
 0x90a   :  { %v2971_v3 = vpop.xlane.xlu0 %2970 }
 0x90b   :  { %v2978_v4 = vsub.f32 %v7415_v56, %v2976_v2  ;;  %v2975_v1 = vmul.f32 0.03125, %v2971_v3  ;;  %v5933_v2 = vld [vmem:[%s7846_s4 + $0xe8] sm:$0xff] }
 0x90c   :  { %v5945_v3 = vld [vmem:[%s7847_s5 + $0xc8] sm:$0xff] }
 0x90d   :  { %v2977_v57 = vsub.f32 %v7418_v60, %v2975_v1  ;;  %v2980_v5 = vmul.f32 %v2978_v4, %v2978_v4  ;;  %v5944_v1 = vld [vmem:[%s7847_s5 + $0xc0] sm:$0xff] }
 0x90f   :  { %v2984_v59 = vsel %vm94_vm0, %v2980_v5, 0.0  ;;  %v2979_v0 = vmul.f32 %v2977_v57, %v2977_v57  ;;  %v5942_v5 = vld [vmem:[%s7847_s5 + $0xb0] sm:$0xff] }
 0x910   :  { %2985 = vadd.xlane.f32.xlu1 %v2984_v59  ;;  %v5941_v59 = vld [vmem:[%s7847_s5 + $0xa8] sm:$0xff] }
 0x911   :  { %v2981_v6 = vsel %vm94_vm0, %v2979_v0, 0.0  ;;  %v5940_v0 = vld [vmem:[%s7847_s5 + $0xa0] sm:$0xff] }
 0x912   :  { %2982 = vadd.xlane.f32.xlu0 %v2981_v6  ;;  %v5951_v6 = vld [vmem:[%s7847_s5 + $0xf8] sm:$0xff] }
 0x999   :  { %v2986_v38 = vpop.xlane.xlu1 %2985 }
 0x99a   :  { %v2988_v40 = vmul.f32 0.03125, %v2986_v38 }
 0x99b   :  { %v2983_v15 = vpop.xlane.xlu0 %2982 }
 0x99c   :  { %v2990_v17 = vadd.f32 1e-05, %v2988_v40  ;;  %v2987_v37 = vmul.f32 0.03125, %v2983_v15 }
 0x99e   :  { %6874 = vrsqrt.f32 %v2990_v17  ;;  %v2989_v39 = vadd.f32 1e-05, %v2987_v37 }
 0x9a0   :  { %6876 = vrsqrt.f32 %v2989_v39 }
 0x9ab   :  { %v6875_v18 = vpop.eup %6874 }
 0x9ac   :  { %v2994_v20 = vmul.f32 %v6875_v18, %v2978_v4  ;;  %v5932_v4 = vld [vmem:[%s7846_s4 + $0xe0] sm:$0xff] }
 0x9ad   :  { %v6877_v21 = vpop.eup %6876 }
 0x9ae   :  { %v2993_v22 = vmul.f32 %v6877_v21, %v2977_v57  ;;  %v3000_v23 = vmul.f32 %v5956_v19, %v2994_v20  ;;  %v5943_v57 = vld [vmem:[%s7847_s5 + $0xb8] sm:$0xff] }
 0x9b0   :  { %v2999_v25 = vmul.f32 %v5956_v19, %v2993_v22  ;;  %v7466_v27 = vadd.f32 %v5957_v24, %v3000_v23 }
 0x9b2   :  { %v7464_v26 = vadd.f32 %v5957_v24, %v2999_v25 }
 0x9b4   :  { %6571 = vmatprep.mubr.msk.f32.mxu0 %vm94_vm0, %v7464_v26  ;;  %6593 = vmatprep.mubr.msk.f32.mxu1 %vm94_vm0, %v7464_v26 }
 0x9b5   :  { %6572 = vmatmul.mubr.msk.f32.vlgmr.msra.gmra.mxu0 %vm94_vm0, %v7466_v27  ;;  %6594 = vmatmul.mubr.msk.f32.vlgmr.msra.gmra.mxu1 %vm94_vm0, %v7466_v27 }
 0x9b6   :  { %6575 = vmatpush3.msra.mxu0 %v5911_v13  ;;  %6608 = vmatpush3.msra.mxu1 %v5923_v14 }
 0x9b7   :  { %6576 = vmatprep.subr.mxu0 %v5910_v28  ;;  %6582 = vmatprep.mubr.msk.f32.mxu0 %vm94_vm0, %v7464_v26 }
 0x9b8   :  { %6609 = vmatprep.subr.mxu1 %v5922_v29  ;;  %6615 = vmatprep.mubr.msk.f32.mxu1 %vm94_vm0, %v7464_v26 }
 0x9b9   :  { %6577 = vmatpush3.msra.mxu0 %v5910_v28  ;;  %6610 = vmatpush3.msra.mxu1 %v5922_v29 }
 0x9ba   :  { %6578 = vmatprep.subr.mxu0 %v5909_v30  ;;  %6611 = vmatprep.subr.mxu1 %v5921_v31 }
 0x9bb   :  { %6579 = vmatpush3.msra.mxu0 %v5909_v30  ;;  %6612 = vmatpush3.msra.mxu1 %v5921_v31 }
 0x9bc   :  { %6580 = vmatprep.subr.mxu0 %v5908_v32  ;;  %6613 = vmatprep.subr.mxu1 %v5920_v33 }
 0x9bd   :  { %6581 = vmatpush3.msra.mxu0 %v5908_v32  ;;  %6614 = vmatpush3.msra.mxu1 %v5920_v33 }
 0x9be   :  { %6583 = vmatmul.mubr.msk.f32.vlgmr.msra.gmra.mxu0 %vm94_vm0, %v7466_v27  ;;  %6596 = vmatprep.subr.mxu0 %v5919_v34 }
 0x9bf   :  { %6616 = vmatmul.mubr.msk.f32.vlgmr.msra.gmra.mxu1 %vm94_vm0, %v7466_v27  ;;  %6629 = vmatprep.subr.mxu1 %v5931_v41 }
 0x9c0   :  { %6597 = vmatpush3.msra.mxu0 %v5919_v34  ;;  %6604 = vmatprep.mubr.msk.f32.mxu0 %vm94_vm0, %v7464_v26 }
 0x9c1   :  { %6630 = vmatpush3.msra.mxu1 %v5931_v41  ;;  %6637 = vmatprep.mubr.msk.f32.mxu1 %vm94_vm0, %v7464_v26 }
 0x9c2   :  { %6598 = vmatprep.subr.mxu0 %v5918_v42  ;;  %6631 = vmatprep.subr.mxu1 %v5930_v43 }
 0x9c3   :  { %6599 = vmatpush3.msra.mxu0 %v5918_v42  ;;  %6632 = vmatpush3.msra.mxu1 %v5930_v43 }
 0x9c4   :  { %6600 = vmatprep.subr.mxu0 %v5917_v44  ;;  %6633 = vmatprep.subr.mxu1 %v5929_v45 }
 0x9c5   :  { %6601 = vmatpush3.msra.mxu0 %v5917_v44  ;;  %6634 = vmatpush3.msra.mxu1 %v5929_v45 }
 0x9c6   :  { %6602 = vmatprep.subr.mxu0 %v5916_v46  ;;  %6635 = vmatprep.subr.mxu1 %v5928_v47 }
 0x9c7   :  { %6603 = vmatpush3.msra.mxu0 %v5916_v46  ;;  %6636 = vmatpush3.msra.mxu1 %v5928_v47 }
 0x9c8   :  { %6605 = vmatmul.mubr.msk.f32.vlgmr.msra.gmra.mxu0 %vm94_vm0, %v7466_v27  ;;  %6618 = vmatprep.subr.mxu0 %v5927_v48 }
 0x9c9   :  { %6638 = vmatmul.mubr.msk.f32.vlgmr.msra.gmra.mxu1 %vm94_vm0, %v7466_v27  ;;  %6651 = vmatprep.subr.mxu1 %v5939_v49 }
 0x9ca   :  { %6619 = vmatpush3.msra.mxu0 %v5927_v48  ;;  %6626 = vmatprep.mubr.msk.f32.mxu0 %vm94_vm0, %v7464_v26 }
 0x9cb   :  { %6652 = vmatpush3.msra.mxu1 %v5939_v49  ;;  %6659 = vmatprep.mubr.msk.f32.mxu1 %vm94_vm0, %v7464_v26 }
 0x9cc   :  { %6620 = vmatprep.subr.mxu0 %v5926_v50  ;;  %6653 = vmatprep.subr.mxu1 %v5938_v51 }
 0x9cd   :  { %6621 = vmatpush3.msra.mxu0 %v5926_v50  ;;  %6654 = vmatpush3.msra.mxu1 %v5938_v51 }
 0x9ce   :  { %6622 = vmatprep.subr.mxu0 %v5925_v52  ;;  %6655 = vmatprep.subr.mxu1 %v5937_v53 }
 0x9cf   :  { %6623 = vmatpush3.msra.mxu0 %v5925_v52  ;;  %6656 = vmatpush3.msra.mxu1 %v5937_v53 }
 0x9d0   :  { %6624 = vmatprep.subr.mxu0 %v5924_v54  ;;  %6657 = vmatprep.subr.mxu1 %v5936_v55 }
 0x9d1   :  { %6625 = vmatpush3.msra.mxu0 %v5924_v54  ;;  %6658 = vmatpush3.msra.mxu1 %v5936_v55 }
 0x9d2   :  { %6627 = vmatmul.mubr.msk.f32.vlgmr.msra.gmra.mxu0 %vm94_vm0, %v7466_v27  ;;  %6640 = vmatprep.subr.mxu0 %v5935_v58 }
 0x9d3   :  { %6660 = vmatmul.mubr.msk.f32.vlgmr.msra.gmra.mxu1 %vm94_vm0, %v7466_v27  ;;  %6673 = vmatprep.subr.mxu1 %v5947_v61 }
 0x9d4   :  { %6641 = vmatpush3.msra.mxu0 %v5935_v58  ;;  %6648 = vmatprep.mubr.msk.f32.mxu0 %vm94_vm0, %v7464_v26 }
 0x9d5   :  { %6674 = vmatpush3.msra.mxu1 %v5947_v61  ;;  %6681 = vmatprep.mubr.msk.f32.mxu1 %vm94_vm0, %v7464_v26 }
 0x9d6   :  { %6642 = vmatprep.subr.mxu0 %v5934_v62  ;;  %6675 = vmatprep.subr.mxu1 %v5946_v63 }
 0x9d7   :  { %6643 = vmatpush3.msra.mxu0 %v5934_v62  ;;  %6676 = vmatpush3.msra.mxu1 %v5946_v63 }
 0x9d8   :  { %6644 = vmatprep.subr.mxu0 %v5933_v2  ;;  %6677 = vmatprep.subr.mxu1 %v5945_v3 }
 0x9d9   :  { %6645 = vmatpush3.msra.mxu0 %v5933_v2  ;;  %6678 = vmatpush3.msra.mxu1 %v5945_v3 }
 0x9da   :  { %6646 = vmatprep.subr.mxu0 %v5932_v4  ;;  %6679 = vmatprep.subr.mxu1 %v5944_v1 }
 0x9db   :  { %6647 = vmatpush3.msra.mxu0 %v5932_v4  ;;  %6680 = vmatpush3.msra.mxu1 %v5944_v1 }
 0x9dc   :  { %6649 = vmatmul.mubr.msk.f32.vlgmr.msra.gmra.mxu0 %vm94_vm0, %v7466_v27  ;;  %6662 = vmatprep.subr.mxu0 %v5943_v57 }
 0x9dd   :  { %6682 = vmatmul.mubr.msk.f32.vlgmr.msra.gmra.mxu1 %vm94_vm0, %v7466_v27  ;;  %6663 = vmatpush3.msra.mxu0 %v5943_v57 }
 0x9de   :  { %6670 = vmatprep.mubr.msk.f32.mxu0 %vm94_vm0, %v7464_v26  ;;  %6664 = vmatprep.subr.mxu0 %v5942_v5 }
 0x9df   :  { %6665 = vmatpush3.msra.mxu0 %v5942_v5  ;;  %6695 = vmatprep.subr.mxu1 %v6944_v16 }
 0x9e0   :  { %6666 = vmatprep.subr.mxu0 %v5941_v59  ;;  %6697 = vmatprep.mubr.msk.f32.mxu1 %vm6945_vm1, %v6944_v16 }
 0x9e1   :  { %6667 = vmatpush3.msra.mxu0 %v5941_v59 }
 0x9e2   :  { %6668 = vmatprep.subr.mxu0 %v5940_v0 }
 0x9e3   :  { %6669 = vmatpush3.msra.mxu0 %v5940_v0 }
 0x9e4   :  { %6671 = vmatmul.mubr.msk.f32.vlgmr.msra.gmra.mxu0 %vm94_vm0, %v7466_v27  ;;  %6684 = vmatprep.subr.mxu0 %v5951_v6 }
 0x9e5   :  { %6685 = vmatpush3.msra.mxu0 %v5951_v6  ;;  %6692 = vmatprep.mubr.msk.f32.mxu0 %vm94_vm0, %v7464_v26 }
 0x9e6   :  { %6686 = vmatprep.subr.mxu0 %v5950_v7 }
 0x9e7   :  { %6687 = vmatpush3.msra.mxu0 %v5950_v7 }
 0x9e8   :  { %6688 = vmatprep.subr.mxu0 %v5949_v8 }
 0x9e9   :  { %6689 = vmatpush3.msra.mxu0 %v5949_v8 }
 0x9ea   :  { %6690 = vmatprep.subr.mxu0 %v5948_v9 }
 0x9eb   :  { %6691 = vmatpush3.msra.mxu0 %v5948_v9 }
 0x9ec   :  { %6693 = vmatmul.mubr.msk.f32.vlgmr.msra.gmra.mxu0 %vm94_vm0, %v7466_v27  ;;  %6705 = vmatprep.subr.mxu0 %v6944_v16 }
 0x9ed   :  { %6707 = vmatprep.mubr.msk.f32.mxu0 %vm6945_vm1, %v6944_v16 }
 0xa75   :  { %v6595_v10 = vpop.f32.mrf.mxu1  ;;  %v6573_v12 = vpop.f32.mrf.mxu0 }
 0xa77   :  { %v3229_v11 = vpop.f32.mrf.mxu1  ;;  %v3079_v13 = vpop.f32.mrf.mxu0 }
 0xa7e   :  { %v6584_v14 = vpop.f32.mrf.mxu0 }
 0xa7f   :  { %v6617_v36 = vpop.f32.mrf.mxu1 }
 0xa80   :  { %v3154_v38 = vpop.f32.mrf.mxu0 }
 0xa81   :  { %v3379_v35 = vpop.f32.mrf.mxu1 }
 0xa82   :  { %6696 = vmatpush3.xpose.msk.msra.mxu1 %vm1040_vm2, %v3379_v35 }
 0xa83   :  { %6700 = vmatprep.subr.mxu1 %v6944_v16 }
 0xa85   :  { %6698 = vmatmul.mubr.msk.f32.vlgmr.msra.gmra.mxu1 %vm1040_vm2, %v3079_v13 }
 0xa86   :  { %6701 = vmatpush3.xpose.msk.msra.mxu1 %vm1040_vm2, %v6617_v36  ;;  %6702 = vmatprep.mubr.msk.f32.mxu1 %vm6945_vm1, %v6944_v16 }
 0xa87   :  { %6710 = vmatprep.subr.mxu1 %v6944_v16 }
 0xa88   :  { %v6606_v40 = vpop.f32.mrf.mxu0 }
 0xa89   :  { %6703 = vmatmul.mubr.msk.f32.vlgmr.msra.gmra.mxu1 %vm1040_vm2, %v6573_v12  ;;  %v6639_v37 = vpop.f32.mrf.mxu1 }
 0xa8a   :  { %6712 = vmatprep.mubr.msk.f32.mxu1 %vm6945_vm1, %v6944_v16  ;;  %v3304_v15 = vpop.f32.mrf.mxu0 }
 0xa8b   :  { %v3529_v18 = vpop.f32.mrf.mxu1 }
 0xa92   :  { %v6628_v17 = vpop.f32.mrf.mxu0 }
 0xa93   :  { %6711 = vmatpush3.xpose.msk.msra.mxu1 %vm1040_vm2, %v6628_v17  ;;  %v6661_v20 = vpop.f32.mrf.mxu1 }
 0xa94   :  { %v3454_v39 = vpop.f32.mrf.mxu0  ;;  %6720 = vmatprep.subr.mxu1 %v6944_v16 }
 0xa95   :  { %6706 = vmatpush3.xpose.msk.msra.mxu0 %vm1040_vm2, %v3454_v39  ;;  %v3679_v22 = vpop.f32.mrf.mxu1 }
 0xa96   :  { %6713 = vmatmul.mubr.msk.f32.vlgmr.msra.gmra.mxu1 %vm1040_vm2, %v6584_v14  ;;  %6715 = vmatprep.subr.mxu0 %v6944_v16 }
 0xa97   :  { %6721 = vmatpush3.xpose.msk.msra.mxu1 %vm1040_vm2, %v6639_v37  ;;  %6722 = vmatprep.mubr.msk.f32.mxu1 %vm6945_vm1, %v6944_v16 }
 0xa98   :  { %6708 = vmatmul.mubr.msk.f32.vlgmr.msra.gmra.mxu0 %vm1040_vm2, %v3154_v38  ;;  %6730 = vmatprep.subr.mxu1 %v6944_v16 }
 0xa99   :  { %6716 = vmatpush3.xpose.msk.msra.mxu0 %vm1040_vm2, %v3529_v18  ;;  %6717 = vmatprep.mubr.msk.f32.mxu0 %vm6945_vm1, %v6944_v16 }
 0xa9a   :  { %6723 = vmatmul.mubr.msk.f32.vlgmr.msra.gmra.mxu1 %vm1040_vm2, %v6595_v10  ;;  %6725 = vmatprep.subr.mxu0 %v6944_v16 }
 0xa9b   :  { %6732 = vmatprep.mubr.msk.f32.mxu1 %vm6945_vm1, %v6944_v16 }
 0xa9c   :  { %v6650_v19 = vpop.f32.mrf.mxu0  ;;  %6718 = vmatmul.mubr.msk.f32.vlgmr.msra.gmra.mxu0 %vm1040_vm2, %v3229_v11 }
 0xa9d   :  { %6731 = vmatpush3.xpose.msk.msra.mxu1 %vm1040_vm2, %v6650_v19  ;;  %6727 = vmatprep.mubr.msk.f32.mxu0 %vm6945_vm1, %v6944_v16  ;;  %v7678_v23 = vpop.f32.mrf.mxu1 }
 0xa9e   :  { %v3604_v21 = vpop.f32.mrf.mxu0  ;;  %6740 = vmatprep.subr.mxu1 %v6944_v16 }
 0xa9f   :  { %6726 = vmatpush3.xpose.msk.msra.mxu0 %vm1040_vm2, %v3604_v21  ;;  %v7680_v24 = vpop.f32.mrf.mxu1 }
 0xaa0   :  { %6733 = vmatmul.mubr.msk.f32.vlgmr.msra.gmra.mxu1 %vm1040_vm2, %v6606_v40  ;;  %6735 = vmatprep.subr.mxu0 %v6944_v16 }
 0xaa1   :  { %6741 = vmatpush3.msra.mxu1 %v6661_v20  ;;  %6742 = vmatprep.mubr.msk.f32.mxu1 %vm6945_vm1, %v6944_v16 }
 0xaa2   :  { %6728 = vmatmul.mubr.msk.f32.vlgmr.msra.gmra.mxu0 %vm1040_vm2, %v3304_v15  ;;  %6750 = vmatprep.subr.mxu1 %v6944_v16 }
 0xaa3   :  { %6736 = vmatpush3.msra.mxu0 %v3679_v22  ;;  %6737 = vmatprep.mubr.msk.f32.mxu0 %vm6945_vm1, %v6944_v16 }
 0xaa4   :  { %6745 = vmatprep.subr.mxu0 %v6944_v16  ;;  %v7683_v32 = vpop.f32.mrf.mxu0 }
 0xaa6   :  { %v7686_v34 = vpop.f32.mrf.mxu0 }
 0xaac   :  { %v7688_v41 = vpop.f32.mrf.mxu0 }
 0xaae   :  { %v7690_v42 = vpop.f32.mrf.mxu0 }
 0xb45   :  { %v3985_v25 = vpop.f32.mrf.mxu1 }
 0xb46   :  { %v4521_v26 = vmul.f32 0.35355338, %v3985_v25 }
 0xb47   :  { %v6699_v27 = vpop.f32.mrf.mxu1 }
 0xb48   :  { %v4529_v28 = vsel %vm1040_vm2, %v4521_v26, -inf }
 0xb49   :  { %4530 = vmax.xlane.f32.xlu0 %v4529_v28  ;;  %v4061_v29 = vpop.f32.mrf.mxu1 }
 0xb4a   :  { %v4522_v30 = vmul.f32 0.35355338, %v4061_v29 }
 0xb4b   :  { %v6704_v31 = vpop.f32.mrf.mxu1 }
 0xb4c   :  { %v4532_v33 = vsel %vm1040_vm2, %v4522_v30, -inf }
 0xb4d   :  { %4533 = vmax.xlane.f32.xlu1 %v4532_v33 }
 0xb56   :  { %v4213_v43 = vpop.f32.mrf.mxu1 }
 0xb57   :  { %v4524_v44 = vmul.f32 0.35355338, %v4213_v43 }
 0xb58   :  { %v4137_v45 = vpop.f32.mrf.mxu0  ;;  %v6714_v46 = vpop.f32.mrf.mxu1 }
 0xb59   :  { %v4523_v47 = vmul.f32 0.35355338, %v4137_v45  ;;  %v4538_v48 = vsel %vm1040_vm2, %v4524_v44, -inf }
 0xb5a   :  { %4539 = vmax.xlane.f32.xlu1 %v4538_v48  ;;  %v6709_v49 = vpop.f32.mrf.mxu0  ;;  %v4365_v50 = vpop.f32.mrf.mxu1 }
 0xb5b   :  { %v4526_v51 = vmul.f32 0.35355338, %v4365_v50  ;;  %v4535_v52 = vsel %vm1040_vm2, %v4523_v47, -inf }
 0xb5c   :  { %v6724_v53 = vpop.f32.mrf.mxu1  ;;  %4536 = vmax.xlane.f32.xlu0 %v4535_v52  ;;  %v4289_v54 = vpop.f32.mrf.mxu0 }
 0xb5d   :  { %v4525_v55 = vmul.f32 0.35355338, %v4289_v54  ;;  %v4544_v58 = vsel %vm1040_vm2, %v4526_v51, -inf }
 0xb5e   :  { %4545 = vmax.xlane.f32.xlu1 %v4544_v58  ;;  %v6719_v61 = vpop.f32.mrf.mxu0 }
 0xb5f   :  { %v4541_v62 = vsel %vm1040_vm2, %v4525_v55, -inf }
 0xb60   :  { %v4517_v63 = vpop.f32.mrf.mxu1  ;;  %4542 = vmax.xlane.f32.xlu0 %v4541_v62 }
 0xb61   :  { %v4528_v2 = vmul.f32 0.35355338, %v4517_v63 }
 0xb62   :  { %v6734_v3 = vpop.f32.mrf.mxu1  ;;  %v4441_v4 = vpop.f32.mrf.mxu0 }
 0xb63   :  { %v4527_v1 = vmul.f32 0.35355338, %v4441_v4  ;;  %v4550_v57 = vsel %vm1040_vm2, %v4528_v2, -inf }
 0xb64   :  { %4551 = vmax.xlane.f32.xlu1 %v4550_v57  ;;  %v6729_v5 = vpop.f32.mrf.mxu0 }
 0xb65   :  { %v4547_v59 = vsel %vm1040_vm2, %v4527_v1, -inf }
 0xb66   :  { %4548 = vmax.xlane.f32.xlu0 %v4547_v59 }
 0xbd2   :  { %v4531_v0 = vpop.xlane.xlu0 %4530 }
 0xbd3   :  { %v4553_v6 = vsub.f32 %v4521_v26, %v4531_v0 }
 0xbd5   :  { %v4561_v7 = vmul.f32 1.442695, %v4553_v6 }
 0xbd6   :  { %v4534_v8 = vpop.xlane.xlu1 %4533 }
 0xbd7   :  { %6878 = vpow2.f32 %v4561_v7  ;;  %v4554_v9 = vsub.f32 %v4522_v30, %v4534_v8 }
 0xbd9   :  { %v4563_v10 = vmul.f32 1.442695, %v4554_v9 }
 0xbdb   :  { %6880 = vpow2.f32 %v4563_v10  ;;  %v5955_v10 = vld [vmem:[%s7848_s6 + $0x38] sm:$0xff] }
 0xbe3   :  { %v4540_v11 = vpop.xlane.xlu1 %4539 }
 0xbe4   :  { %v6879_v36 = vpop.eup %6878  ;;  %v4556_v12 = vsub.f32 %v4524_v44, %v4540_v11 }
 0xbe5   :  { %v4537_v35 = vpop.xlane.xlu0 %4536  ;;  %v4577_v13 = vsel %vm1040_vm2, %v6879_v36, 0.0 }
 0xbe6   :  { %v4567_v14 = vmul.f32 1.442695, %v4556_v12  ;;  %v4555_v38 = vsub.f32 %v4523_v47, %v4537_v35  ;;  %4578 = vadd.xlane.f32.xlu0 %v4577_v13 }
 0xbe7   :  { %v4546_v40 = vpop.xlane.xlu1 %4545 }
 0xbe8   :  { %v6881_v15 = vpop.eup %6880  ;;  %6882 = vpow2.f32 %v4567_v14  ;;  %v4565_v17 = vmul.f32 1.442695, %v4555_v38  ;;  %v4558_v37 = vsub.f32 %v4526_v51, %v4546_v40 }
 0xbe9   :  { %v4543_v39 = vpop.xlane.xlu0 %4542  ;;  %v4580_v18 = vsel %vm1040_vm2, %v6881_v15, 0.0 }
 0xbea   :  { %6884 = vpow2.f32 %v4565_v17  ;;  %v4571_v19 = vmul.f32 1.442695, %v4558_v37  ;;  %v4557_v20 = vsub.f32 %v4525_v55, %v4543_v39  ;;  %4581 = vadd.xlane.f32.xlu1 %v4580_v18 }
 0xbec   :  { %6886 = vpow2.f32 %v4571_v19  ;;  %v4569_v21 = vmul.f32 1.442695, %v4557_v20 }
 0xbed   :  { %v4552_v22 = vpop.xlane.xlu1 %4551 }
 0xbee   :  { %6888 = vpow2.f32 %v4569_v21  ;;  %v4560_v25 = vsub.f32 %v4528_v2, %v4552_v22 }
 0xbef   :  { %v4549_v26 = vpop.xlane.xlu0 %4548 }
 0xbf0   :  { %v4575_v27 = vmul.f32 1.442695, %v4560_v25  ;;  %v4559_v28 = vsub.f32 %v4527_v1, %v4549_v26 }
 0xbf2   :  { %6890 = vpow2.f32 %v4575_v27  ;;  %v4573_v29 = vmul.f32 1.442695, %v4559_v28 }
 0xbf4   :  { %6892 = vpow2.f32 %v4573_v29 }
 0xbf5   :  { %v6883_v30 = vpop.eup %6882 }
 0xbf6   :  { %v4586_v31 = vsel %vm1040_vm2, %v6883_v30, 0.0 }
 0xbf7   :  { %v6885_v33 = vpop.eup %6884  ;;  %4587 = vadd.xlane.f32.xlu1 %v4586_v31 }
 0xbf8   :  { %v4583_v43 = vsel %vm1040_vm2, %v6885_v33, 0.0 }
 0xbf9   :  { %v6887_v44 = vpop.eup %6886  ;;  %4584 = vadd.xlane.f32.xlu0 %v4583_v43  ;;  %v6014_v43 = vld [vmem:[%s7843_s1 + $0x8] ss:$0 sm:$0xff] }
 0xbfa   :  { %v4592_v45 = vsel %vm1040_vm2, %v6887_v44, 0.0 }
 0xbfb   :  { %v6889_v46 = vpop.eup %6888  ;;  %4593 = vadd.xlane.f32.xlu1 %v4592_v45 }
 0xbfc   :  { %v4589_v47 = vsel %vm1040_vm2, %v6889_v46, 0.0 }
 0xbfd   :  { %4590 = vadd.xlane.f32.xlu0 %v4589_v47 }
 0xbff   :  { %v6891_v48 = vpop.eup %6890 }
 0xc00   :  { %v4598_v49 = vsel %vm1040_vm2, %v6891_v48, 0.0 }
 0xc01   :  { %v6893_v50 = vpop.eup %6892  ;;  %4599 = vadd.xlane.f32.xlu1 %v4598_v49 }
 0xc02   :  { %v4595_v51 = vsel %vm1040_vm2, %v6893_v50, 0.0 }
 0xc03   :  { %4596 = vadd.xlane.f32.xlu0 %v4595_v51 }
 0xc6f   :  { %v4579_v52 = vpop.xlane.xlu0 %4578 }
 0xc70   :  { %6894 = vrcp.f32 %v4579_v52 }
 0xc73   :  { %v4582_v53 = vpop.xlane.xlu1 %4581 }
 0xc74   :  { %6896 = vrcp.f32 %v4582_v53 }
 0xc7d   :  { %v6895_v54 = vpop.eup %6894 }
 0xc7e   :  { %v4617_v55 = vmul.f32 %v6895_v54, %v6879_v36 }
 0xc80   :  { %v4588_v58 = vpop.xlane.xlu1 %4587  ;;  %6738 = vmatmul.mubr.msk.f32.vlgmr.msra.gmra.mxu0 %vm1040_vm2, %v4617_v55 }
 0xc81   :  { %v6897_v61 = vpop.eup %6896  ;;  %6898 = vrcp.f32 %v4588_v58  ;;  %6746 = vmatpush3.msra.mxu0 %v7686_v34  ;;  %6747 = vmatprep.mubr.msk.f32.mxu0 %vm6945_vm1, %v6944_v16 }
 0xc82   :  { %v4585_v62 = vpop.xlane.xlu0 %4584  ;;  %v4618_v63 = vmul.f32 %v6897_v61, %v6881_v15  ;;  %6755 = vmatprep.subr.mxu0 %v6944_v16 }
 0xc83   :  { %6900 = vrcp.f32 %v4585_v62 }
 0xc84   :  { %v4594_v2 = vpop.xlane.xlu1 %4593  ;;  %6743 = vmatmul.mubr.msk.f32.vlgmr.msra.gmra.mxu1 %vm1040_vm2, %v4618_v63 }
 0xc85   :  { %6902 = vrcp.f32 %v4594_v2  ;;  %6751 = vmatpush3.msra.mxu1 %v7683_v32  ;;  %6752 = vmatprep.mubr.msk.f32.mxu1 %vm6945_vm1, %v6944_v16 }
 0xc86   :  { %v4591_v3 = vpop.xlane.xlu0 %4590  ;;  %6760 = vmatprep.subr.mxu1 %v6944_v16 }
 0xc87   :  { %6904 = vrcp.f32 %v4591_v3 }
 0xc8a   :  { %v4600_v34 = vpop.xlane.xlu1 %4599 }
 0xc8b   :  { %6906 = vrcp.f32 %v4600_v34 }
 0xc8c   :  { %v4597_v4 = vpop.xlane.xlu0 %4596 }
 0xc8d   :  { %6908 = vrcp.f32 %v4597_v4  ;;  %v6020_v4 = vld [vmem:[%s7849_s7 + $0x38] sm:$0xff] }
 0xc8e   :  { %v6899_v1 = vpop.eup %6898 }
 0xc8f   :  { %v4620_v57 = vmul.f32 %v6899_v1, %v6883_v30  ;;  %v6019_v1 = vld [vmem:[%s7849_s7 + $0x30] sm:$0xff] }
 0xc90   :  { %v6901_v5 = vpop.eup %6900 }
 0xc91   :  { %6753 = vmatmul.mubr.msk.f32.vlgmr.msra.gmra.mxu1 %vm1040_vm2, %v4620_v57  ;;  %v4619_v59 = vmul.f32 %v6901_v5, %v6885_v33  ;;  %v6018_v57 = vld [vmem:[%s7849_s7 + $0x28] sm:$0xff]  ;;  %v6017_v5 = vld [vmem:[%s7849_s7 + $0x20] sm:$0xff] }
 0xc92   :  { %v6903_v0 = vpop.eup %6902  ;;  %6761 = vmatpush3.msra.mxu1 %v7678_v23  ;;  %6762 = vmatprep.mubr.msk.f32.mxu1 %vm6945_vm1, %v6944_v16 }
 0xc93   :  { %6748 = vmatmul.mubr.msk.f32.vlgmr.msra.gmra.mxu0 %vm1040_vm2, %v4619_v59  ;;  %6770 = vmatprep.subr.mxu1 %v6944_v16  ;;  %v4622_v32 = vmul.f32 %v6903_v0, %v6887_v44 }
 0xc94   :  { %v6905_v6 = vpop.eup %6904  ;;  %6756 = vmatpush3.msra.mxu0 %v7680_v24  ;;  %6757 = vmatprep.mubr.msk.f32.mxu0 %vm6945_vm1, %v6944_v16 }
 0xc95   :  { %6763 = vmatmul.mubr.msk.f32.vlgmr.msra.gmra.mxu1 %vm1040_vm2, %v4622_v32  ;;  %6765 = vmatprep.subr.mxu0 %v6944_v16  ;;  %v4621_v7 = vmul.f32 %v6905_v6, %v6889_v46 }
 0xc96   :  { %6771 = vmatpush3.msra.mxu1 %v7688_v41  ;;  %6772 = vmatprep.mubr.msk.f32.mxu1 %vm6945_vm1, %v6944_v16  ;;  %v5952_v41 = vld [vmem:[%s7848_s6 + $0x20] sm:$0xff] }
 0xc97   :  { %6758 = vmatmul.mubr.msk.f32.vlgmr.msra.gmra.mxu0 %vm1040_vm2, %v4621_v7  ;;  %6780 = vmatprep.subr.mxu1 %v5952_v41 }
 0xc98   :  { %v6907_v23 = vpop.eup %6906  ;;  %6766 = vmatpush3.msra.mxu0 %v7690_v42  ;;  %6767 = vmatprep.mubr.msk.f32.mxu0 %vm6945_vm1, %v6944_v16  ;;  %v5953_v42 = vld [vmem:[%s7848_s6 + $0x28] sm:$0xff]  ;;  %v5954_v16 = vld [vmem:[%s7848_s6 + $0x30] sm:$0xff] }
 0xc99   :  { %v4624_v24 = vmul.f32 %v6907_v23, %v6891_v48  ;;  %6775 = vmatprep.subr.mxu0 %v5953_v42 }
 0xc9a   :  { %v6909_v8 = vpop.eup %6908 }
 0xc9b   :  { %6773 = vmatmul.mubr.msk.f32.vlgmr.msra.gmra.mxu1 %vm1040_vm2, %v4624_v24  ;;  %v4623_v9 = vmul.f32 %v6909_v8, %v6893_v50  ;;  %v6015_v8 = vld [vmem:[%s7843_s1 + $0x9] ss:$0 sm:$0xff] }
 0xc9c   :  { %6781 = vmatpush3.msra.mxu1 %v5952_v41 }
 0xc9d   :  { %6768 = vmatmul.mubr.msk.f32.vlgmr.msra.gmra.mxu0 %vm1040_vm2, %v4623_v9  ;;  %6790 = vmatprep.subr.mxu1 %v5955_v10 }
 0xc9e   :  { %6776 = vmatpush3.msra.mxu0 %v5953_v42 }
 0xc9f   :  { %6785 = vmatprep.subr.mxu0 %v5954_v16 }
 0xd40   :  { %v4694_v11 = vpop.f32.mrf.mxu0 }
 0xd41   :  { %6782 = vmatprep.mubr.msk.f32.mxu1 %vm1040_vm2, %v4694_v11 }
 0xd42   :  { %v6739_v36 = vpop.f32.mrf.mxu0 }
 0xd44   :  { %v4767_v12 = vpop.f32.mrf.mxu1 }
 0xd45   :  { %6783 = vmatmul.mubr.msk.f32.vlgmr.msra.gmra.mxu1 %vm1040_vm2, %v4767_v12 }
 0xd46   :  { %v6744_v35 = vpop.f32.mrf.mxu1  ;;  %6791 = vmatpush3.msra.mxu1 %v5955_v10  ;;  %v6016_v10 = vld [vmem:[%s7843_s1 + $0xa] ss:$0 sm:$0xff] }
 0xd47   :  { %v6031_v35 = vld [vmem:[%s7850_s8 + $0x78] sm:$0xff] }
 0xd48   :  { %6806 = vmatprep.subr.mxu1 %v6031_v35 }
 0xd51   :  { %v4913_v13 = vpop.f32.mrf.mxu1 }
 0xd53   :  { %v4840_v14 = vpop.f32.mrf.mxu0  ;;  %v6754_v38 = vpop.f32.mrf.mxu1 }
 0xd54   :  { %6777 = vmatprep.mubr.msk.f32.mxu0 %vm1040_vm2, %v4840_v14  ;;  %v6029_v14 = vld [vmem:[%s7850_s8 + $0x68] sm:$0xff]  ;;  %v6028_v38 = vld [vmem:[%s7850_s8 + $0x60] sm:$0xff] }
 0xd55   :  { %v6749_v40 = vpop.f32.mrf.mxu0  ;;  %v5059_v15 = vpop.f32.mrf.mxu1  ;;  %6778 = vmatmul.mubr.msk.f32.vlgmr.msra.gmra.mxu0 %vm1040_vm2, %v4913_v13  ;;  %v6030_v13 = vld [vmem:[%s7850_s8 + $0x70] sm:$0xff] }
 0xd56   :  { %6786 = vmatpush3.msra.mxu0 %v5954_v16  ;;  %v6027_v40 = vld [vmem:[%s7850_s8 + $0x58] sm:$0xff] }
 0xd57   :  { %v4986_v17 = vpop.f32.mrf.mxu0  ;;  %v6764_v37 = vpop.f32.mrf.mxu1  ;;  %6795 = vmatprep.subr.mxu0 %v6020_v4 }
 0xd58   :  { %6787 = vmatprep.mubr.msk.f32.mxu0 %vm1040_vm2, %v4986_v17  ;;  %v6025_v17 = vld [vmem:[%s7850_s8 + $0x48] sm:$0xff]  ;;  %v6024_v37 = vld [vmem:[%s7850_s8 + $0x40] sm:$0xff] }
 0xd59   :  { %v6759_v39 = vpop.f32.mrf.mxu0  ;;  %6788 = vmatmul.mubr.msk.f32.vlgmr.msra.gmra.mxu0 %vm1040_vm2, %v5059_v15  ;;  %v6026_v15 = vld [vmem:[%s7850_s8 + $0x50] sm:$0xff] }
 0xd5a   :  { %6796 = vmatpush3.msra.mxu0 %v6020_v4  ;;  %v6021_v39 = vld [vmem:[%s7844_s2 + $0x1] ss:$0 sm:$0xff] }
 0xd5b   :  { %v5205_v18 = vpop.f32.mrf.mxu1  ;;  %6797 = vmatprep.subr.mxu0 %v6019_v1 }
 0xd5c   :  { %6798 = vmatpush3.msra.mxu0 %v6019_v1 }
 0xd5d   :  { %v5132_v19 = vpop.f32.mrf.mxu0  ;;  %v6774_v20 = vpop.f32.mrf.mxu1  ;;  %6799 = vmatprep.subr.mxu0 %v6018_v57 }
 0xd5e   :  { %6792 = vmatprep.mubr.msk.f32.mxu1 %vm1040_vm2, %v5132_v19  ;;  %6800 = vmatpush3.msra.mxu0 %v6018_v57 }
 0xd5f   :  { %v6769_v21 = vpop.f32.mrf.mxu0  ;;  %6793 = vmatmul.mubr.msk.f32.vlgmr.msra.gmra.mxu1 %vm1040_vm2, %v5205_v18  ;;  %6801 = vmatprep.subr.mxu0 %v6017_v5 }
 0xd60   :  { %6802 = vmatpush3.msra.mxu0 %v6017_v5  ;;  %6807 = vmatpush3.msra.mxu1 %v6031_v35 }
 0xd61   :  { %6808 = vmatprep.subr.mxu1 %v6030_v13 }
 0xd62   :  { %6809 = vmatpush3.msra.mxu1 %v6030_v13 }
 0xd63   :  { %6810 = vmatprep.subr.mxu1 %v6029_v14 }
 0xd64   :  { %6811 = vmatpush3.msra.mxu1 %v6029_v14 }
 0xd65   :  { %6812 = vmatprep.subr.mxu1 %v6028_v38 }
 0xd66   :  { %6813 = vmatpush3.msra.mxu1 %v6028_v38 }
 0xd67   :  { %6814 = vmatprep.subr.mxu1 %v6027_v40 }
 0xd68   :  { %6815 = vmatpush3.msra.mxu1 %v6027_v40 }
 0xd69   :  { %6816 = vmatprep.subr.mxu1 %v6026_v15 }
 0xd6a   :  { %6817 = vmatpush3.msra.mxu1 %v6026_v15 }
 0xd6b   :  { %6818 = vmatprep.subr.mxu1 %v6025_v17 }
 0xd6c   :  { %6819 = vmatpush3.msra.mxu1 %v6025_v17 }
 0xd6d   :  { %6820 = vmatprep.subr.mxu1 %v6024_v37 }
 0xd6e   :  { %6821 = vmatpush3.msra.mxu1 %v6024_v37 }
 0xe05   :  { %v6784_v26 = vpop.f32.mrf.mxu1 }
 0xe07   :  { %v5362_v29 = vpop.f32.mrf.mxu1 }
 0xe15   :  { %v6779_v22 = vpop.f32.mrf.mxu0 }
 0xe16   :  { %v5368_v28 = vadd.f32 %v6784_v26, %v6779_v22 }
 0xe17   :  { %v5281_v25 = vpop.f32.mrf.mxu0 }
 0xe18   :  { %v5363_v31 = vadd.f32 %v5362_v29, %v5281_v25 }
 0xe19   :  { %v6789_v27 = vpop.f32.mrf.mxu0 }
 0xe1a   :  { %v5453_v33 = vadd.f32 %v6789_v27, %v5368_v28 }
 0xe1b   :  { %v5443_v30 = vpop.f32.mrf.mxu0 }
 0xe1c   :  { %v5452_v45 = vadd.f32 %v5443_v30, %v5363_v31 }
 0xe1f   :  { %v6794_v44 = vpop.f32.mrf.mxu1 }
 0xe20   :  { %v5536_v46 = vadd.f32 %v6794_v44, %v5453_v33  ;;  %v6032_v44 = vld [vmem:[%s7843_s1 + $0xb] ss:$0 sm:$0xff] }
 0xe21   :  { %v5526_v47 = vpop.f32.mrf.mxu1 }
 0xe22   :  { %v5542_v48 = vadd.f32 %v6014_v43, %v5536_v46  ;;  %v5535_v49 = vadd.f32 %v5526_v47, %v5452_v45 }
 0xe24   :  { %v7760_v50 = vadd.f32 %v5542_v48, %v7415_v56  ;;  %v5541_v51 = vadd.f32 %v6014_v43, %v5535_v49 }
 0xe26   :  { %v7763_v52 = vadd.f32 %v5541_v51, %v7418_v60  ;;  %v5548_v53 = vsel %vm94_vm0, %v7760_v50, 0.0 }
 0xe27   :  { %5549 = vadd.xlane.f32.xlu1 %v5548_v53 }
 0xe28   :  { %v5545_v54 = vsel %vm94_vm0, %v7763_v52, 0.0 }
 0xe29   :  { %5546 = vadd.xlane.f32.xlu0 %v5545_v54 }
 0xeb0   :  { %v5550_v55 = vpop.xlane.xlu1 %5549 }
 0xeb1   :  { %v5552_v58 = vmul.f32 0.03125, %v5550_v55 }
 0xeb2   :  { %v5547_v61 = vpop.xlane.xlu0 %5546 }
 0xeb3   :  { %v5554_v62 = vsub.f32 %v7760_v50, %v5552_v58  ;;  %v5551_v63 = vmul.f32 0.03125, %v5547_v61 }
 0xeb5   :  { %v5553_v56 = vsub.f32 %v7763_v52, %v5551_v63  ;;  %v5556_v2 = vmul.f32 %v5554_v62, %v5554_v62 }
 0xeb7   :  { %v5560_v60 = vsel %vm94_vm0, %v5556_v2, 0.0  ;;  %v5555_v3 = vmul.f32 %v5553_v56, %v5553_v56 }
 0xeb8   :  { %5561 = vadd.xlane.f32.xlu1 %v5560_v60 }
 0xeb9   :  { %v5557_v34 = vsel %vm94_vm0, %v5555_v3, 0.0 }
 0xeba   :  { %5558 = vadd.xlane.f32.xlu0 %v5557_v34 }
 0xf41   :  { %v5562_v59 = vpop.xlane.xlu1 %5561 }
 0xf42   :  { %v5564_v0 = vmul.f32 0.03125, %v5562_v59 }
 0xf43   :  { %v5559_v32 = vpop.xlane.xlu0 %5558 }
 0xf44   :  { %v5566_v6 = vadd.f32 1e-05, %v5564_v0  ;;  %v5563_v7 = vmul.f32 0.03125, %v5559_v32  ;;  %v6035_v0 = vld [vmem:[%s7843_s1 + $0xc] ss:$0 sm:$0xff] }
 0xf46   :  { %6910 = vrsqrt.f32 %v5566_v6  ;;  %v5565_v23 = vadd.f32 1e-05, %v5563_v7  ;;  %v6036_v7 = vld [vmem:[%s7843_s1 + $0xd] ss:$0 sm:$0xff] }
 0xf48   :  { %6912 = vrsqrt.f32 %v5565_v23 }
 0xf53   :  { %v6911_v24 = vpop.eup %6910 }
 0xf54   :  { %v5570_v9 = vmul.f32 %v6911_v24, %v5554_v62 }
 0xf55   :  { %v6913_v41 = vpop.eup %6912 }
 0xf56   :  { %v5569_v42 = vmul.f32 %v6913_v41, %v5553_v56  ;;  %v5576_v16 = vmul.f32 %v6015_v8, %v5570_v9 }
 0xf58   :  { %v5575_v11 = vmul.f32 %v6015_v8, %v5569_v42  ;;  %v5582_v12 = vadd.f32 %v6016_v10, %v5576_v16 }
 0xf5a   :  { %v5581_v36 = vadd.f32 %v6016_v10, %v5575_v11 }
 0xf5c   :  { %6803 = vmatprep.mubr.msk.f32.mxu0 %vm94_vm0, %v5581_v36 }
 0xf5d   :  { %6804 = vmatmul.mubr.msk.f32.vlgmr.msra.gmra.mxu0 %vm94_vm0, %v5582_v12 }
0x101d   :  { %v6805_v18 = vpop.f32.mrf.mxu0 }
0x101e   :  { %v5670_v19 = vadd.f32 %v6805_v18, %v6021_v39 }
0x101f   :  { %v5664_v20 = vpop.f32.mrf.mxu0 }
0x1020   :  { %v5676_v21 = vmul.f32 0.70710677, %v5670_v19  ;;  %v5665_v22 = vadd.f32 %v6021_v39, %v5664_v20  ;;  %v5674_v31 = vmul.f32 0.5, %v5670_v19 }
0x1022   :  { %6914 = verf.f32 %v5676_v21  ;;  %v5675_v25 = vmul.f32 0.70710677, %v5665_v22  ;;  %v5673_v29 = vmul.f32 0.5, %v5665_v22 }
0x1024   :  { %6916 = verf.f32 %v5675_v25 }
0x102f   :  { %v6915_v26 = vpop.eup %6914 }
0x1030   :  { %v5680_v28 = vadd.f32 1.0, %v6915_v26 }
0x1031   :  { %v6917_v27 = vpop.eup %6916 }
0x1032   :  { %v5679_v30 = vadd.f32 1.0, %v6917_v27  ;;  %v5682_v43 = vmul.f32 %v5680_v28, %v5674_v31 }
0x1034   :  { %v5681_v33 = vmul.f32 %v5679_v30, %v5673_v29 }
0x1036   :  { %6822 = vmatprep.mubr.msk.f32.mxu1 %vm2822_vm3, %v5681_v33 }
0x1037   :  { %6823 = vmatmul.mubr.msk.f32.vlgmr.msra.gmra.mxu1 %vm2822_vm3, %v5682_v43 }
0x10f7   :  { %v6824_v45 = vpop.f32.mrf.mxu1 }
0x10f8   :  { %v5774_v46 = vadd.f32 %v6824_v45, %v6032_v44 }
0x10f9   :  { %v5768_v47 = vpop.f32.mrf.mxu1 }
0x10fa   :  { %v5769_v48 = vadd.f32 %v6032_v44, %v5768_v47  ;;  %v5778_v49 = vadd.f32 %v5774_v46, %v7760_v50 }
0x10fc   :  { %v5784_v51 = vsel %vm94_vm0, %v5778_v49, 0.0  ;;  %v5777_v53 = vadd.f32 %v5769_v48, %v7763_v52 }
0x10fd   :  { %5785 = vadd.xlane.f32.xlu1 %v5784_v51 }
0x10fe   :  { %v5781_v54 = vsel %vm94_vm0, %v5777_v53, 0.0 }
0x10ff   :  { %5782 = vadd.xlane.f32.xlu0 %v5781_v54 }
0x1186   :  { %v5786_v55 = vpop.xlane.xlu1 %5785 }
0x1187   :  { %v5788_v58 = vmul.f32 0.03125, %v5786_v55 }
0x1188   :  { %v5783_v61 = vpop.xlane.xlu0 %5782 }
0x1189   :  { %v5790_v62 = vsub.f32 %v5778_v49, %v5788_v58  ;;  %v5787_v63 = vmul.f32 0.03125, %v5783_v61 }
0x118b   :  { %v5789_v56 = vsub.f32 %v5777_v53, %v5787_v63  ;;  %v5792_v2 = vmul.f32 %v5790_v62, %v5790_v62 }
0x118d   :  { %v5796_v60 = vsel %vm94_vm0, %v5792_v2, 0.0  ;;  %v5791_v3 = vmul.f32 %v5789_v56, %v5789_v56 }
0x118e   :  { %5797 = vadd.xlane.f32.xlu1 %v5796_v60 }
0x118f   :  { %v5793_v50 = vsel %vm94_vm0, %v5791_v3, 0.0 }
0x1190   :  { %5794 = vadd.xlane.f32.xlu0 %v5793_v50 }
0x1217   :  { %v5798_v34 = vpop.xlane.xlu1 %5797 }
0x1218   :  { %v5800_v52 = vmul.f32 0.03125, %v5798_v34 }
0x1219   :  { %v5795_v4 = vpop.xlane.xlu0 %5794 }
0x121a   :  { %v5802_v1 = vadd.f32 1e-05, %v5800_v52  ;;  %v5799_v57 = vmul.f32 0.03125, %v5795_v4 }
0x121c   :  { %6918 = vrsqrt.f32 %v5802_v1  ;;  %v5801_v5 = vadd.f32 1e-05, %v5799_v57 }
0x121e   :  { %6920 = vrsqrt.f32 %v5801_v5 }
0x1229   :  { %v6919_v59 = vpop.eup %6918 }
0x122a   :  { %v5806_v32 = vmul.f32 %v6919_v59, %v5790_v62 }
0x122b   :  { %v6921_v6 = vpop.eup %6920 }
0x122c   :  { %v5805_v23 = vmul.f32 %v6921_v6, %v5789_v56  ;;  %v5812_v24 = vmul.f32 %v6035_v0, %v5806_v32 }
0x122e   :  { %v5811_v8 = vmul.f32 %v6035_v0, %v5805_v23  ;;  %v5818_v9 = vadd.f32 %v6036_v7, %v5812_v24 }
0x1230   :  { %v5817_v41 = vadd.f32 %v6036_v7, %v5811_v8  ;;  %5820 = vst.msk [vmem:[#allocation2 + $0x8] sm:$0xff] %vm94_vm0, %v5818_v9 }
0x1232   :  { %5819 = vst.msk [vmem:[#allocation2] sm:$0xff] %vm94_vm0, %v5817_v41 }
0x1233   :  { %6933 = shalt.err (!%p6930_p4)
}
0x1234   :  { %s6947_s1 = smov 128   ;;  %s6948_s7 = smov 8  }
0x1235   :  { %5832 = dma.vmem_to_hbm [thread:$0]  %s5827_s23, 256, %s7851_s9, [#allocation3], %s6947_s1, %s6947_s1, %s6948_s7  }
0x1236   :  { %6942 = dma.done.wait [#allocation3], 256  }
0x1237   :  { %6943 = vsyncadd [#allocation3], 4294967040 }
0x1238   :  { %5836 = vsyncpa [#allocation3], 1 }

</bundles_post_ra>
